<compile_context>
chip_gen: v6e
topology: v6e:2x2x1
jax: 0.10.0
libtpu: 0.0.40
codegen_flags: <defaults>
</compile_context>

<pallas_src>
import functools

import jax
import jax.numpy as jnp
from jax.experimental import pallas as pl
from jax.experimental.pallas import tpu as pltpu

LANE = 128
# Pinned matmul precision (review: pin explicitly so ambient settings can't
# silently change pass counts).  HIGHEST = f32-accurate MXU passes -> matches a
# float32 PyTorch forward to ~1e-6.  Set to jax.lax.Precision.DEFAULT for
# single-pass bf16 operands (fastest) if looser (~1e-3) agreement is acceptable.
MXU_PRECISION = jax.lax.Precision.HIGHEST


def _round_up(n, m):
    return ((n + m - 1) // m) * m


def lstm_tagger_kernel(x_ref, wih_ref, whh_ref, b_ref, wout_ref, bout_ref,
                       out_ref, *, hidden_dim, seq_len):
    """LSTM recurrence over one batch tile + final Linear on the last hidden state.

    x_ref    : (T, TB, E)     time-major embeddings for TB sequences
    wih_ref  : (E, 4H)        input->gates weights, i/f/o columns pre-scaled 0.5
    whh_ref  : (H, 4H)        hidden->gates weights, i/f/o columns pre-scaled 0.5
    b_ref    : (1, 4H)        (b_ih + b_hh), i/f/o entries pre-scaled 0.5
    wout_ref : (H, OUT_PAD)   hidden2tag weight (transposed, lane-padded to 128)
    bout_ref : (1, OUT_PAD)   hidden2tag bias (lane-padded)
    out_ref  : (TB, OUT_PAD)
    """
    H = hidden_dim
    T = seq_len
    TB = x_ref.shape[1]
    E = x_ref.shape[2]

    # Hoisted input projection: one (T*TB, E) @ (E, 4H) MXU matmul + bias,
    # entirely off the serial h->h chain.
    x2 = x_ref[...].reshape(T * TB, E)
    xg = (jnp.dot(x2, wih_ref[...], precision=MXU_PRECISION,
                  preferred_element_type=jnp.float32) + b_ref[...])
    xg = xg.reshape(T, TB, 4 * H)

    # Loop-invariant recurrent weight, read once, VMEM/vreg resident.
    whh = whh_ref[...]                                            # (H, 4H)

    # init_hidden(): zeros; state lives in vregs, never in VMEM scratch.
    h = jnp.zeros((TB, H), jnp.float32)
    c = jnp.zeros((TB, H), jnp.float32)

    def step(xg_t, h, c):
        # Only h @ W_hh remains on the serial MXU path:  (TB, H) @ (H, 4H).
        z = xg_t + jnp.dot(h, whh, precision=MXU_PRECISION,
                           preferred_element_type=jnp.float32)    # (TB, 4H)
        tg = jnp.tanh(z)                      # single EUP op over packed gates
        i_g = 0.5 * tg[:, 0 * H:1 * H] + 0.5  # sigmoid(z) = 0.5*tanh(z/2)+0.5
        f_g = 0.5 * tg[:, 1 * H:2 * H] + 0.5
        g_g = tg[:, 2 * H:3 * H]              # g gate columns were NOT scaled
        o_g = 0.5 * tg[:, 3 * H:4 * H] + 0.5
        c = f_g * c + i_g * g_g
        h = o_g * jnp.tanh(c)
        return h, c

    if T <= 32:
        # Small static T -> full unroll (constant indices, max LLO visibility).
        for t in range(T):
            h, c = step(xg[t], h, c)
    else:
        # Longer sequences: bounded code size / vreg pressure, partial unroll.
        def body(t, carry):
            hh, cc = carry
            return step(xg[t], hh, cc)
        h, c = jax.lax.fori_loop(0, T, body, (h, c), unroll=4)

    # hidden2tag(h) on the final hidden state; lane-padded -> unmasked store.
    out_ref[...] = (jnp.dot(h, wout_ref[...], precision=MXU_PRECISION,
                            preferred_element_type=jnp.float32) + bout_ref[...])


def prepare_params(w_ih, w_hh, b_ih, b_hh, w_out, b_out):
    """One-time glue (outside the per-call path): transpose, fold biases,
    pre-scale i/f/o gate columns by 0.5 for the sigmoid-via-tanh trick, and
    lane-pad the hidden2tag projection to 128."""
    four_h, _ = w_ih.shape
    H = four_h // 4
    tagset = w_out.shape[0]

    gate_scale = jnp.concatenate([
        jnp.full((H,), 0.5, jnp.float32),   # i
        jnp.full((H,), 0.5, jnp.float32),   # f
        jnp.ones((H,), jnp.float32),        # g (tanh gate, untouched)
        jnp.full((H,), 0.5, jnp.float32),   # o
    ])                                                             # (4H,)

    wih_t = (w_ih.T.astype(jnp.float32) * gate_scale[None, :])     # (E, 4H)
    whh_t = (w_hh.T.astype(jnp.float32) * gate_scale[None, :])     # (H, 4H)
    b = ((b_ih + b_hh).astype(jnp.float32) * gate_scale
         ).reshape(1, four_h)                                      # (1, 4H)

    n_out = _round_up(tagset, LANE)
    wout_p = jnp.zeros((H, n_out), jnp.float32).at[:, :tagset].set(
        w_out.T.astype(jnp.float32))                               # (H, 128)
    bout_p = jnp.zeros((1, n_out), jnp.float32).at[:, :tagset].set(
        b_out.astype(jnp.float32))                                 # (1, 128)

    return dict(wih_t=wih_t, whh_t=whh_t, b=b, wout_p=wout_p, bout_p=bout_p,
                hidden_dim=H, tagset=tagset)


@functools.partial(jax.jit,
                   static_argnames=("hidden_dim", "tagset", "batch_tile"))
def _forward(x_bte, wih_t, whh_t, b, wout_p, bout_p, *,
             hidden_dim, tagset, batch_tile):
    B, T, E = x_bte.shape
    H = hidden_dim
    n_out = wout_p.shape[1]
    TB = batch_tile
    B_pad = _round_up(B, TB)

    x = x_bte.astype(jnp.float32)
    if B_pad != B:
        x = jnp.pad(x, ((0, B_pad - B), (0, 0), (0, 0)))
    x_tm = jnp.transpose(x, (1, 0, 2))                 # time-major (T, B_pad, E)

    grid = (B_pad // TB,)
    kernel = functools.partial(lstm_tagger_kernel,
                               hidden_dim=H, seq_len=T)

    flops = int(B_pad * (2 * T * E * 4 * H + 2 * T * H * 4 * H + 2 * H * n_out))
    transcendentals = int(B_pad * T * 5 * H)           # packed-gate tanh + tanh(c)
    bytes_accessed = int(4 * (x_tm.size + wih_t.size + whh_t.size + b.size
                              + wout_p.size + bout_p.size + B_pad * n_out))

    out_pad = pl.pallas_call(
        kernel,
        out_shape=jax.ShapeDtypeStruct((B_pad, n_out), jnp.float32),
        grid=grid,
        in_specs=[
            # Per-batch-tile input block.
            pl.BlockSpec((T, TB, E), lambda i: (0, i, 0)),
            # Constant index_maps: weights DMA'd once, VMEM-resident across grid.
            pl.BlockSpec(wih_t.shape, lambda i: (0, 0)),
            pl.BlockSpec(whh_t.shape, lambda i: (0, 0)),
            pl.BlockSpec(b.shape, lambda i: (0, 0)),
            pl.BlockSpec(wout_p.shape, lambda i: (0, 0)),
            pl.BlockSpec(bout_p.shape, lambda i: (0, 0)),
        ],
        out_specs=pl.BlockSpec((TB, n_out), lambda i: (i, 0)),
        compiler_params=pltpu.CompilerParams(
            dimension_semantics=("parallel",)),        # v7x: split batch over 2 TCs
        cost_estimate=pl.CostEstimate(flops=flops,
                                      transcendentals=transcendentals,
                                      bytes_accessed=bytes_accessed),
    )(x_tm, wih_t, whh_t, b, wout_p, bout_p)

    # .view(1, -1) per sequence -> row b is the module's (1, tagset) output.
    return out_pad[:B, :tagset]


def lstm_tagger_forward(x, params, batch_tile=None):
    """x: (B, T, E) — B independent sequences, each processed exactly as the
    module's forward (batch=1 LSTM from zero state, hidden2tag on final h)."""
    B = x.shape[0]
    if batch_tile is None:
        # Production sizing: 256 on v6e/v7x (2x256x256 MXU), 128 on v5e.
        batch_tile = min(256, _round_up(B, 8))
    assert batch_tile % 8 == 0, "batch tile must be sublane-aligned (multiple of 8)"
    return _forward(x, params["wih_t"], params["whh_t"], params["b"],
                    params["wout_p"], params["bout_p"],
                    hidden_dim=params["hidden_dim"], tagset=params["tagset"],
                    batch_tile=batch_tile)


if __name__ == "__main__":
    # Small shapes consistent with the module's forward; batch of independent
    # sequences to exercise the grid / resident-weight path.
    BATCH = 16
    SEQ_LEN = 8
    EMBEDDING_DIM = 16
    HIDDEN_DIM = 32
    TAGSET_SIZE = 8

    key = jax.random.PRNGKey(0)
    k_x, k_wih, k_whh, k_bih, k_bhh, k_wo, k_bo = jax.random.split(key, 7)

    # Deterministic parameter init mimicking PyTorch's U(-1/sqrt(H), 1/sqrt(H)).
    bound = 1.0 / (HIDDEN_DIM ** 0.5)
    x = jax.random.normal(k_x, (BATCH, SEQ_LEN, EMBEDDING_DIM), dtype=jnp.float32)
    w_ih = jax.random.uniform(k_wih, (4 * HIDDEN_DIM, EMBEDDING_DIM),
                              minval=-bound, maxval=bound, dtype=jnp.float32)
    w_hh = jax.random.uniform(k_whh, (4 * HIDDEN_DIM, HIDDEN_DIM),
                              minval=-bound, maxval=bound, dtype=jnp.float32)
    b_ih = jax.random.uniform(k_bih, (4 * HIDDEN_DIM,),
                              minval=-bound, maxval=bound, dtype=jnp.float32)
    b_hh = jax.random.uniform(k_bhh, (4 * HIDDEN_DIM,),
                              minval=-bound, maxval=bound, dtype=jnp.float32)
    w_out = jax.random.uniform(k_wo, (TAGSET_SIZE, HIDDEN_DIM),
                               minval=-bound, maxval=bound, dtype=jnp.float32)
    b_out = jax.random.uniform(k_bo, (TAGSET_SIZE,),
                               minval=-bound, maxval=bound, dtype=jnp.float32)

    params = prepare_params(w_ih, w_hh, b_ih, b_hh, w_out, b_out)
    out = lstm_tagger_forward(x, params, batch_tile=8)   # grid = (2,)
    out = jax.block_until_ready(out)

    # Pure-JAX reference (original unscaled weights, standard sigmoid/tanh),
    # pinned to f32-accurate matmuls to act as the PyTorch-f32 stand-in.
    def ref_forward(x, w_ih, w_hh, b_ih, b_hh, w_out, b_out):
        hp = jax.lax.Precision.HIGHEST
        B, T, _ = x.shape
        H = w_hh.shape[1]
        h = jnp.zeros((B, H), jnp.float32)
        c = jnp.zeros((B, H), jnp.float32)
        for t in range(T):
            g = (jnp.dot(x[:, t, :], w_ih.T, precision=hp)
                 + jnp.dot(h, w_hh.T, precision=hp) + b_ih + b_hh)
            i = jax.nn.sigmoid(g[:, 0 * H:1 * H])
            f = jax.nn.sigmoid(g[:, 1 * H:2 * H])
            gg = jnp.tanh(g[:, 2 * H:3 * H])
            o = jax.nn.sigmoid(g[:, 3 * H:4 * H])
            c = f * c + i * gg
            h = o * jnp.tanh(c)
        return jnp.dot(h, w_out.T, precision=hp) + b_out[None, :]

    ref = ref_forward(x, w_ih, w_hh, b_ih, b_hh, w_out, b_out)
    assert out.shape == (BATCH, TAGSET_SIZE)
    assert jnp.allclose(out, ref, atol=1e-4, rtol=1e-4), (out, ref)
    print("KERNEL_OK")
</pallas_src>

<mosaic_0001>
module attributes {stable_mosaic.version = 11 : i64} {
  func.func @lstm_tagger_kernel(%arg0: i32, %arg1: memref<8x8x16xf32, #tpu.memory_space<vmem>>, %arg2: memref<16x128xf32, #tpu.memory_space<vmem>>, %arg3: memref<32x128xf32, #tpu.memory_space<vmem>>, %arg4: memref<1x128xf32, #tpu.memory_space<vmem>>, %arg5: memref<32x128xf32, #tpu.memory_space<vmem>>, %arg6: memref<1x128xf32, #tpu.memory_space<vmem>>, %arg7: memref<8x128xf32, #tpu.memory_space<vmem>>) attributes {dimension_semantics = [#tpu.dimension_semantics<parallel>], iteration_bounds = array<i64: 2>, scalar_prefetch = 0 : i64, scratch_operands = 0 : i64, tpu.core_type = #tpu.core_type<tc>, window_params = [{transform_indices = @transform_0, window_bounds = array<i64: 8, 8, 16>}, {pipeline_mode = #tpu.pipeline_mode<synchronous>, transform_indices = @transform_1, window_bounds = array<i64: 16, 128>}, {pipeline_mode = #tpu.pipeline_mode<synchronous>, transform_indices = @transform_2, window_bounds = array<i64: 32, 128>}, {pipeline_mode = #tpu.pipeline_mode<synchronous>, transform_indices = @transform_3, window_bounds = array<i64: 1, 128>}, {pipeline_mode = #tpu.pipeline_mode<synchronous>, transform_indices = @transform_4, window_bounds = array<i64: 32, 128>}, {pipeline_mode = #tpu.pipeline_mode<synchronous>, transform_indices = @transform_5, window_bounds = array<i64: 1, 128>}, {transform_indices = @transform_6, window_bounds = array<i64: 8, 128>}]} {
    %c0 = arith.constant 0 : index
    %c0_0 = arith.constant 0 : index
    %c0_1 = arith.constant 0 : index
    %0 = vector.load %arg1[%c0, %c0_0, %c0_1] : memref<8x8x16xf32, #tpu.memory_space<vmem>>, vector<8x8x16xf32>
    %1 = vector.shape_cast %0 : vector<8x8x16xf32> to vector<64x16xf32>
    %c0_2 = arith.constant 0 : index
    %c0_3 = arith.constant 0 : index
    %2 = vector.load %arg2[%c0_2, %c0_3] : memref<16x128xf32, #tpu.memory_space<vmem>>, vector<16x128xf32>
    %cst = arith.constant dense<0.000000e+00> : vector<64x128xf32>
    %3 = tpu.matmul %1, %2, %cst {dimension_numbers = #tpu.dot_dimension_numbers<[1], [0], [0], [1], [0, 0, 1, 1], [], []>, precision = #tpu.contract_precision<fp32>} : vector<64x16xf32>, vector<16x128xf32>, vector<64x128xf32> -> vector<64x128xf32>
    %c0_4 = arith.constant 0 : index
    %c0_5 = arith.constant 0 : index
    %4 = vector.load %arg4[%c0_4, %c0_5] : memref<1x128xf32, #tpu.memory_space<vmem>>, vector<1x128xf32>
    %5 = vector.broadcast %4 : vector<1x128xf32> to vector<64x128xf32>
    %6 = arith.addf %3, %5 : vector<64x128xf32>
    %7 = vector.shape_cast %6 : vector<64x128xf32> to vector<8x8x128xf32>
    %c0_6 = arith.constant 0 : index
    %c0_7 = arith.constant 0 : index
    %8 = vector.load %arg3[%c0_6, %c0_7] : memref<32x128xf32, #tpu.memory_space<vmem>>, vector<32x128xf32>
    %cst_8 = arith.constant 0.000000e+00 : f32
    %9 = vector.broadcast %cst_8 : f32 to vector<8x32xf32>
    %cst_9 = arith.constant 0.000000e+00 : f32
    %10 = vector.broadcast %cst_9 : f32 to vector<8x32xf32>
    %11 = vector.extract_strided_slice %7 {offsets = [0, 0, 0], sizes = [1, 8, 128], strides = [1, 1, 1]} : vector<8x8x128xf32> to vector<1x8x128xf32>
    %12 = vector.shape_cast %11 : vector<1x8x128xf32> to vector<8x128xf32>
    %cst_10 = arith.constant dense<0.000000e+00> : vector<8x128xf32>
    %13 = tpu.matmul %9, %8, %cst_10 {dimension_numbers = #tpu.dot_dimension_numbers<[1], [0], [0], [1], [0, 0, 1, 1], [], []>, precision = #tpu.contract_precision<fp32>} : vector<8x32xf32>, vector<32x128xf32>, vector<8x128xf32> -> vector<8x128xf32>
    %14 = arith.addf %12, %13 : vector<8x128xf32>
    %15 = math.tanh %14 : vector<8x128xf32>
    %16 = vector.extract_strided_slice %15 {offsets = [0, 0], sizes = [8, 32], strides = [1, 1]} : vector<8x128xf32> to vector<8x32xf32>
    %cst_11 = arith.constant 5.000000e-01 : f32
    %17 = vector.broadcast %cst_11 : f32 to vector<8x32xf32>
    %18 = arith.mulf %17, %16 : vector<8x32xf32>
    %cst_12 = arith.constant 5.000000e-01 : f32
    %19 = vector.broadcast %cst_12 : f32 to vector<8x32xf32>
    %20 = arith.addf %18, %19 : vector<8x32xf32>
    %21 = vector.extract_strided_slice %15 {offsets = [0, 32], sizes = [8, 32], strides = [1, 1]} : vector<8x128xf32> to vector<8x32xf32>
    %cst_13 = arith.constant 5.000000e-01 : f32
    %22 = vector.broadcast %cst_13 : f32 to vector<8x32xf32>
    %23 = arith.mulf %22, %21 : vector<8x32xf32>
    %cst_14 = arith.constant 5.000000e-01 : f32
    %24 = vector.broadcast %cst_14 : f32 to vector<8x32xf32>
    %25 = arith.addf %23, %24 : vector<8x32xf32>
    %26 = vector.extract_strided_slice %15 {offsets = [0, 64], sizes = [8, 32], strides = [1, 1]} : vector<8x128xf32> to vector<8x32xf32>
    %27 = vector.extract_strided_slice %15 {offsets = [0, 96], sizes = [8, 32], strides = [1, 1]} : vector<8x128xf32> to vector<8x32xf32>
    %cst_15 = arith.constant 5.000000e-01 : f32
    %28 = vector.broadcast %cst_15 : f32 to vector<8x32xf32>
    %29 = arith.mulf %28, %27 : vector<8x32xf32>
    %cst_16 = arith.constant 5.000000e-01 : f32
    %30 = vector.broadcast %cst_16 : f32 to vector<8x32xf32>
    %31 = arith.addf %29, %30 : vector<8x32xf32>
    %32 = arith.mulf %25, %10 : vector<8x32xf32>
    %33 = arith.mulf %20, %26 : vector<8x32xf32>
    %34 = arith.addf %32, %33 : vector<8x32xf32>
    %35 = math.tanh %34 : vector<8x32xf32>
    %36 = arith.mulf %31, %35 : vector<8x32xf32>
    %37 = vector.extract_strided_slice %7 {offsets = [1, 0, 0], sizes = [1, 8, 128], strides = [1, 1, 1]} : vector<8x8x128xf32> to vector<1x8x128xf32>
    %38 = vector.shape_cast %37 : vector<1x8x128xf32> to vector<8x128xf32>
    %cst_17 = arith.constant dense<0.000000e+00> : vector<8x128xf32>
    %39 = tpu.matmul %36, %8, %cst_17 {dimension_numbers = #tpu.dot_dimension_numbers<[1], [0], [0], [1], [0, 0, 1, 1], [], []>, precision = #tpu.contract_precision<fp32>} : vector<8x32xf32>, vector<32x128xf32>, vector<8x128xf32> -> vector<8x128xf32>
    %40 = arith.addf %38, %39 : vector<8x128xf32>
    %41 = math.tanh %40 : vector<8x128xf32>
    %42 = vector.extract_strided_slice %41 {offsets = [0, 0], sizes = [8, 32], strides = [1, 1]} : vector<8x128xf32> to vector<8x32xf32>
    %cst_18 = arith.constant 5.000000e-01 : f32
    %43 = vector.broadcast %cst_18 : f32 to vector<8x32xf32>
    %44 = arith.mulf %43, %42 : vector<8x32xf32>
    %cst_19 = arith.constant 5.000000e-01 : f32
    %45 = vector.broadcast %cst_19 : f32 to vector<8x32xf32>
    %46 = arith.addf %44, %45 : vector<8x32xf32>
    %47 = vector.extract_strided_slice %41 {offsets = [0, 32], sizes = [8, 32], strides = [1, 1]} : vector<8x128xf32> to vector<8x32xf32>
    %cst_20 = arith.constant 5.000000e-01 : f32
    %48 = vector.broadcast %cst_20 : f32 to vector<8x32xf32>
    %49 = arith.mulf %48, %47 : vector<8x32xf32>
    %cst_21 = arith.constant 5.000000e-01 : f32
    %50 = vector.broadcast %cst_21 : f32 to vector<8x32xf32>
    %51 = arith.addf %49, %50 : vector<8x32xf32>
    %52 = vector.extract_strided_slice %41 {offsets = [0, 64], sizes = [8, 32], strides = [1, 1]} : vector<8x128xf32> to vector<8x32xf32>
    %53 = vector.extract_strided_slice %41 {offsets = [0, 96], sizes = [8, 32], strides = [1, 1]} : vector<8x128xf32> to vector<8x32xf32>
    %cst_22 = arith.constant 5.000000e-01 : f32
    %54 = vector.broadcast %cst_22 : f32 to vector<8x32xf32>
    %55 = arith.mulf %54, %53 : vector<8x32xf32>
    %cst_23 = arith.constant 5.000000e-01 : f32
    %56 = vector.broadcast %cst_23 : f32 to vector<8x32xf32>
    %57 = arith.addf %55, %56 : vector<8x32xf32>
    %58 = arith.mulf %51, %34 : vector<8x32xf32>
    %59 = arith.mulf %46, %52 : vector<8x32xf32>
    %60 = arith.addf %58, %59 : vector<8x32xf32>
    %61 = math.tanh %60 : vector<8x32xf32>
    %62 = arith.mulf %57, %61 : vector<8x32xf32>
    %63 = vector.extract_strided_slice %7 {offsets = [2, 0, 0], sizes = [1, 8, 128], strides = [1, 1, 1]} : vector<8x8x128xf32> to vector<1x8x128xf32>
    %64 = vector.shape_cast %63 : vector<1x8x128xf32> to vector<8x128xf32>
    %cst_24 = arith.constant dense<0.000000e+00> : vector<8x128xf32>
    %65 = tpu.matmul %62, %8, %cst_24 {dimension_numbers = #tpu.dot_dimension_numbers<[1], [0], [0], [1], [0, 0, 1, 1], [], []>, precision = #tpu.contract_precision<fp32>} : vector<8x32xf32>, vector<32x128xf32>, vector<8x128xf32> -> vector<8x128xf32>
    %66 = arith.addf %64, %65 : vector<8x128xf32>
    %67 = math.tanh %66 : vector<8x128xf32>
    %68 = vector.extract_strided_slice %67 {offsets = [0, 0], sizes = [8, 32], strides = [1, 1]} : vector<8x128xf32> to vector<8x32xf32>
    %cst_25 = arith.constant 5.000000e-01 : f32
    %69 = vector.broadcast %cst_25 : f32 to vector<8x32xf32>
    %70 = arith.mulf %69, %68 : vector<8x32xf32>
    %cst_26 = arith.constant 5.000000e-01 : f32
    %71 = vector.broadcast %cst_26 : f32 to vector<8x32xf32>
    %72 = arith.addf %70, %71 : vector<8x32xf32>
    %73 = vector.extract_strided_slice %67 {offsets = [0, 32], sizes = [8, 32], strides = [1, 1]} : vector<8x128xf32> to vector<8x32xf32>
    %cst_27 = arith.constant 5.000000e-01 : f32
    %74 = vector.broadcast %cst_27 : f32 to vector<8x32xf32>
    %75 = arith.mulf %74, %73 : vector<8x32xf32>
    %cst_28 = arith.constant 5.000000e-01 : f32
    %76 = vector.broadcast %cst_28 : f32 to vector<8x32xf32>
    %77 = arith.addf %75, %76 : vector<8x32xf32>
    %78 = vector.extract_strided_slice %67 {offsets = [0, 64], sizes = [8, 32], strides = [1, 1]} : vector<8x128xf32> to vector<8x32xf32>
    %79 = vector.extract_strided_slice %67 {offsets = [0, 96], sizes = [8, 32], strides = [1, 1]} : vector<8x128xf32> to vector<8x32xf32>
    %cst_29 = arith.constant 5.000000e-01 : f32
    %80 = vector.broadcast %cst_29 : f32 to vector<8x32xf32>
    %81 = arith.mulf %80, %79 : vector<8x32xf32>
    %cst_30 = arith.constant 5.000000e-01 : f32
    %82 = vector.broadcast %cst_30 : f32 to vector<8x32xf32>
    %83 = arith.addf %81, %82 : vector<8x32xf32>
    %84 = arith.mulf %77, %60 : vector<8x32xf32>
    %85 = arith.mulf %72, %78 : vector<8x32xf32>
    %86 = arith.addf %84, %85 : vector<8x32xf32>
    %87 = math.tanh %86 : vector<8x32xf32>
    %88 = arith.mulf %83, %87 : vector<8x32xf32>
    %89 = vector.extract_strided_slice %7 {offsets = [3, 0, 0], sizes = [1, 8, 128], strides = [1, 1, 1]} : vector<8x8x128xf32> to vector<1x8x128xf32>
    %90 = vector.shape_cast %89 : vector<1x8x128xf32> to vector<8x128xf32>
    %cst_31 = arith.constant dense<0.000000e+00> : vector<8x128xf32>
    %91 = tpu.matmul %88, %8, %cst_31 {dimension_numbers = #tpu.dot_dimension_numbers<[1], [0], [0], [1], [0, 0, 1, 1], [], []>, precision = #tpu.contract_precision<fp32>} : vector<8x32xf32>, vector<32x128xf32>, vector<8x128xf32> -> vector<8x128xf32>
    %92 = arith.addf %90, %91 : vector<8x128xf32>
    %93 = math.tanh %92 : vector<8x128xf32>
    %94 = vector.extract_strided_slice %93 {offsets = [0, 0], sizes = [8, 32], strides = [1, 1]} : vector<8x128xf32> to vector<8x32xf32>
    %cst_32 = arith.constant 5.000000e-01 : f32
    %95 = vector.broadcast %cst_32 : f32 to vector<8x32xf32>
    %96 = arith.mulf %95, %94 : vector<8x32xf32>
    %cst_33 = arith.constant 5.000000e-01 : f32
    %97 = vector.broadcast %cst_33 : f32 to vector<8x32xf32>
    %98 = arith.addf %96, %97 : vector<8x32xf32>
    %99 = vector.extract_strided_slice %93 {offsets = [0, 32], sizes = [8, 32], strides = [1, 1]} : vector<8x128xf32> to vector<8x32xf32>
    %cst_34 = arith.constant 5.000000e-01 : f32
    %100 = vector.broadcast %cst_34 : f32 to vector<8x32xf32>
    %101 = arith.mulf %100, %99 : vector<8x32xf32>
    %cst_35 = arith.constant 5.000000e-01 : f32
    %102 = vector.broadcast %cst_35 : f32 to vector<8x32xf32>
    %103 = arith.addf %101, %102 : vector<8x32xf32>
    %104 = vector.extract_strided_slice %93 {offsets = [0, 64], sizes = [8, 32], strides = [1, 1]} : vector<8x128xf32> to vector<8x32xf32>
    %105 = vector.extract_strided_slice %93 {offsets = [0, 96], sizes = [8, 32], strides = [1, 1]} : vector<8x128xf32> to vector<8x32xf32>
    %cst_36 = arith.constant 5.000000e-01 : f32
    %106 = vector.broadcast %cst_36 : f32 to vector<8x32xf32>
    %107 = arith.mulf %106, %105 : vector<8x32xf32>
    %cst_37 = arith.constant 5.000000e-01 : f32
    %108 = vector.broadcast %cst_37 : f32 to vector<8x32xf32>
    %109 = arith.addf %107, %108 : vector<8x32xf32>
    %110 = arith.mulf %103, %86 : vector<8x32xf32>
    %111 = arith.mulf %98, %104 : vector<8x32xf32>
    %112 = arith.addf %110, %111 : vector<8x32xf32>
    %113 = math.tanh %112 : vector<8x32xf32>
    %114 = arith.mulf %109, %113 : vector<8x32xf32>
    %115 = vector.extract_strided_slice %7 {offsets = [4, 0, 0], sizes = [1, 8, 128], strides = [1, 1, 1]} : vector<8x8x128xf32> to vector<1x8x128xf32>
    %116 = vector.shape_cast %115 : vector<1x8x128xf32> to vector<8x128xf32>
    %cst_38 = arith.constant dense<0.000000e+00> : vector<8x128xf32>
    %117 = tpu.matmul %114, %8, %cst_38 {dimension_numbers = #tpu.dot_dimension_numbers<[1], [0], [0], [1], [0, 0, 1, 1], [], []>, precision = #tpu.contract_precision<fp32>} : vector<8x32xf32>, vector<32x128xf32>, vector<8x128xf32> -> vector<8x128xf32>
    %118 = arith.addf %116, %117 : vector<8x128xf32>
    %119 = math.tanh %118 : vector<8x128xf32>
    %120 = vector.extract_strided_slice %119 {offsets = [0, 0], sizes = [8, 32], strides = [1, 1]} : vector<8x128xf32> to vector<8x32xf32>
    %cst_39 = arith.constant 5.000000e-01 : f32
    %121 = vector.broadcast %cst_39 : f32 to vector<8x32xf32>
    %122 = arith.mulf %121, %120 : vector<8x32xf32>
    %cst_40 = arith.constant 5.000000e-01 : f32
    %123 = vector.broadcast %cst_40 : f32 to vector<8x32xf32>
    %124 = arith.addf %122, %123 : vector<8x32xf32>
    %125 = vector.extract_strided_slice %119 {offsets = [0, 32], sizes = [8, 32], strides = [1, 1]} : vector<8x128xf32> to vector<8x32xf32>
    %cst_41 = arith.constant 5.000000e-01 : f32
    %126 = vector.broadcast %cst_41 : f32 to vector<8x32xf32>
    %127 = arith.mulf %126, %125 : vector<8x32xf32>
    %cst_42 = arith.constant 5.000000e-01 : f32
    %128 = vector.broadcast %cst_42 : f32 to vector<8x32xf32>
    %129 = arith.addf %127, %128 : vector<8x32xf32>
    %130 = vector.extract_strided_slice %119 {offsets = [0, 64], sizes = [8, 32], strides = [1, 1]} : vector<8x128xf32> to vector<8x32xf32>
    %131 = vector.extract_strided_slice %119 {offsets = [0, 96], sizes = [8, 32], strides = [1, 1]} : vector<8x128xf32> to vector<8x32xf32>
    %cst_43 = arith.constant 5.000000e-01 : f32
    %132 = vector.broadcast %cst_43 : f32 to vector<8x32xf32>
    %133 = arith.mulf %132, %131 : vector<8x32xf32>
    %cst_44 = arith.constant 5.000000e-01 : f32
    %134 = vector.broadcast %cst_44 : f32 to vector<8x32xf32>
    %135 = arith.addf %133, %134 : vector<8x32xf32>
    %136 = arith.mulf %129, %112 : vector<8x32xf32>
    %137 = arith.mulf %124, %130 : vector<8x32xf32>
    %138 = arith.addf %136, %137 : vector<8x32xf32>
    %139 = math.tanh %138 : vector<8x32xf32>
    %140 = arith.mulf %135, %139 : vector<8x32xf32>
    %141 = vector.extract_strided_slice %7 {offsets = [5, 0, 0], sizes = [1, 8, 128], strides = [1, 1, 1]} : vector<8x8x128xf32> to vector<1x8x128xf32>
    %142 = vector.shape_cast %141 : vector<1x8x128xf32> to vector<8x128xf32>
    %cst_45 = arith.constant dense<0.000000e+00> : vector<8x128xf32>
    %143 = tpu.matmul %140, %8, %cst_45 {dimension_numbers = #tpu.dot_dimension_numbers<[1], [0], [0], [1], [0, 0, 1, 1], [], []>, precision = #tpu.contract_precision<fp32>} : vector<8x32xf32>, vector<32x128xf32>, vector<8x128xf32> -> vector<8x128xf32>
    %144 = arith.addf %142, %143 : vector<8x128xf32>
    %145 = math.tanh %144 : vector<8x128xf32>
    %146 = vector.extract_strided_slice %145 {offsets = [0, 0], sizes = [8, 32], strides = [1, 1]} : vector<8x128xf32> to vector<8x32xf32>
    %cst_46 = arith.constant 5.000000e-01 : f32
    %147 = vector.broadcast %cst_46 : f32 to vector<8x32xf32>
    %148 = arith.mulf %147, %146 : vector<8x32xf32>
    %cst_47 = arith.constant 5.000000e-01 : f32
    %149 = vector.broadcast %cst_47 : f32 to vector<8x32xf32>
    %150 = arith.addf %148, %149 : vector<8x32xf32>
    %151 = vector.extract_strided_slice %145 {offsets = [0, 32], sizes = [8, 32], strides = [1, 1]} : vector<8x128xf32> to vector<8x32xf32>
    %cst_48 = arith.constant 5.000000e-01 : f32
    %152 = vector.broadcast %cst_48 : f32 to vector<8x32xf32>
    %153 = arith.mulf %152, %151 : vector<8x32xf32>
    %cst_49 = arith.constant 5.000000e-01 : f32
    %154 = vector.broadcast %cst_49 : f32 to vector<8x32xf32>
    %155 = arith.addf %153, %154 : vector<8x32xf32>
    %156 = vector.extract_strided_slice %145 {offsets = [0, 64], sizes = [8, 32], strides = [1, 1]} : vector<8x128xf32> to vector<8x32xf32>
    %157 = vector.extract_strided_slice %145 {offsets = [0, 96], sizes = [8, 32], strides = [1, 1]} : vector<8x128xf32> to vector<8x32xf32>
    %cst_50 = arith.constant 5.000000e-01 : f32
    %158 = vector.broadcast %cst_50 : f32 to vector<8x32xf32>
    %159 = arith.mulf %158, %157 : vector<8x32xf32>
    %cst_51 = arith.constant 5.000000e-01 : f32
    %160 = vector.broadcast %cst_51 : f32 to vector<8x32xf32>
    %161 = arith.addf %159, %160 : vector<8x32xf32>
    %162 = arith.mulf %155, %138 : vector<8x32xf32>
    %163 = arith.mulf %150, %156 : vector<8x32xf32>
    %164 = arith.addf %162, %163 : vector<8x32xf32>
    %165 = math.tanh %164 : vector<8x32xf32>
    %166 = arith.mulf %161, %165 : vector<8x32xf32>
    %167 = vector.extract_strided_slice %7 {offsets = [6, 0, 0], sizes = [1, 8, 128], strides = [1, 1, 1]} : vector<8x8x128xf32> to vector<1x8x128xf32>
    %168 = vector.shape_cast %167 : vector<1x8x128xf32> to vector<8x128xf32>
    %cst_52 = arith.constant dense<0.000000e+00> : vector<8x128xf32>
    %169 = tpu.matmul %166, %8, %cst_52 {dimension_numbers = #tpu.dot_dimension_numbers<[1], [0], [0], [1], [0, 0, 1, 1], [], []>, precision = #tpu.contract_precision<fp32>} : vector<8x32xf32>, vector<32x128xf32>, vector<8x128xf32> -> vector<8x128xf32>
    %170 = arith.addf %168, %169 : vector<8x128xf32>
    %171 = math.tanh %170 : vector<8x128xf32>
    %172 = vector.extract_strided_slice %171 {offsets = [0, 0], sizes = [8, 32], strides = [1, 1]} : vector<8x128xf32> to vector<8x32xf32>
    %cst_53 = arith.constant 5.000000e-01 : f32
    %173 = vector.broadcast %cst_53 : f32 to vector<8x32xf32>
    %174 = arith.mulf %173, %172 : vector<8x32xf32>
    %cst_54 = arith.constant 5.000000e-01 : f32
    %175 = vector.broadcast %cst_54 : f32 to vector<8x32xf32>
    %176 = arith.addf %174, %175 : vector<8x32xf32>
    %177 = vector.extract_strided_slice %171 {offsets = [0, 32], sizes = [8, 32], strides = [1, 1]} : vector<8x128xf32> to vector<8x32xf32>
    %cst_55 = arith.constant 5.000000e-01 : f32
    %178 = vector.broadcast %cst_55 : f32 to vector<8x32xf32>
    %179 = arith.mulf %178, %177 : vector<8x32xf32>
    %cst_56 = arith.constant 5.000000e-01 : f32
    %180 = vector.broadcast %cst_56 : f32 to vector<8x32xf32>
    %181 = arith.addf %179, %180 : vector<8x32xf32>
    %182 = vector.extract_strided_slice %171 {offsets = [0, 64], sizes = [8, 32], strides = [1, 1]} : vector<8x128xf32> to vector<8x32xf32>
    %183 = vector.extract_strided_slice %171 {offsets = [0, 96], sizes = [8, 32], strides = [1, 1]} : vector<8x128xf32> to vector<8x32xf32>
    %cst_57 = arith.constant 5.000000e-01 : f32
    %184 = vector.broadcast %cst_57 : f32 to vector<8x32xf32>
    %185 = arith.mulf %184, %183 : vector<8x32xf32>
    %cst_58 = arith.constant 5.000000e-01 : f32
    %186 = vector.broadcast %cst_58 : f32 to vector<8x32xf32>
    %187 = arith.addf %185, %186 : vector<8x32xf32>
    %188 = arith.mulf %181, %164 : vector<8x32xf32>
    %189 = arith.mulf %176, %182 : vector<8x32xf32>
    %190 = arith.addf %188, %189 : vector<8x32xf32>
    %191 = math.tanh %190 : vector<8x32xf32>
    %192 = arith.mulf %187, %191 : vector<8x32xf32>
    %193 = vector.extract_strided_slice %7 {offsets = [7, 0, 0], sizes = [1, 8, 128], strides = [1, 1, 1]} : vector<8x8x128xf32> to vector<1x8x128xf32>
    %194 = vector.shape_cast %193 : vector<1x8x128xf32> to vector<8x128xf32>
    %cst_59 = arith.constant dense<0.000000e+00> : vector<8x128xf32>
    %195 = tpu.matmul %192, %8, %cst_59 {dimension_numbers = #tpu.dot_dimension_numbers<[1], [0], [0], [1], [0, 0, 1, 1], [], []>, precision = #tpu.contract_precision<fp32>} : vector<8x32xf32>, vector<32x128xf32>, vector<8x128xf32> -> vector<8x128xf32>
    %196 = arith.addf %194, %195 : vector<8x128xf32>
    %197 = math.tanh %196 : vector<8x128xf32>
    %198 = vector.extract_strided_slice %197 {offsets = [0, 0], sizes = [8, 32], strides = [1, 1]} : vector<8x128xf32> to vector<8x32xf32>
    %cst_60 = arith.constant 5.000000e-01 : f32
    %199 = vector.broadcast %cst_60 : f32 to vector<8x32xf32>
    %200 = arith.mulf %199, %198 : vector<8x32xf32>
    %cst_61 = arith.constant 5.000000e-01 : f32
    %201 = vector.broadcast %cst_61 : f32 to vector<8x32xf32>
    %202 = arith.addf %200, %201 : vector<8x32xf32>
    %203 = vector.extract_strided_slice %197 {offsets = [0, 32], sizes = [8, 32], strides = [1, 1]} : vector<8x128xf32> to vector<8x32xf32>
    %cst_62 = arith.constant 5.000000e-01 : f32
    %204 = vector.broadcast %cst_62 : f32 to vector<8x32xf32>
    %205 = arith.mulf %204, %203 : vector<8x32xf32>
    %cst_63 = arith.constant 5.000000e-01 : f32
    %206 = vector.broadcast %cst_63 : f32 to vector<8x32xf32>
    %207 = arith.addf %205, %206 : vector<8x32xf32>
    %208 = vector.extract_strided_slice %197 {offsets = [0, 64], sizes = [8, 32], strides = [1, 1]} : vector<8x128xf32> to vector<8x32xf32>
    %209 = vector.extract_strided_slice %197 {offsets = [0, 96], sizes = [8, 32], strides = [1, 1]} : vector<8x128xf32> to vector<8x32xf32>
    %cst_64 = arith.constant 5.000000e-01 : f32
    %210 = vector.broadcast %cst_64 : f32 to vector<8x32xf32>
    %211 = arith.mulf %210, %209 : vector<8x32xf32>
    %cst_65 = arith.constant 5.000000e-01 : f32
    %212 = vector.broadcast %cst_65 : f32 to vector<8x32xf32>
    %213 = arith.addf %211, %212 : vector<8x32xf32>
    %214 = arith.mulf %207, %190 : vector<8x32xf32>
    %215 = arith.mulf %202, %208 : vector<8x32xf32>
    %216 = arith.addf %214, %215 : vector<8x32xf32>
    %217 = math.tanh %216 : vector<8x32xf32>
    %218 = arith.mulf %213, %217 : vector<8x32xf32>
    %c0_66 = arith.constant 0 : index
    %c0_67 = arith.constant 0 : index
    %219 = vector.load %arg5[%c0_66, %c0_67] : memref<32x128xf32, #tpu.memory_space<vmem>>, vector<32x128xf32>
    %cst_68 = arith.constant dense<0.000000e+00> : vector<8x128xf32>
    %220 = tpu.matmul %218, %219, %cst_68 {dimension_numbers = #tpu.dot_dimension_numbers<[1], [0], [0], [1], [0, 0, 1, 1], [], []>, precision = #tpu.contract_precision<fp32>} : vector<8x32xf32>, vector<32x128xf32>, vector<8x128xf32> -> vector<8x128xf32>
    %c0_69 = arith.constant 0 : index
    %c0_70 = arith.constant 0 : index
    %221 = vector.load %arg6[%c0_69, %c0_70] : memref<1x128xf32, #tpu.memory_space<vmem>>, vector<1x128xf32>
    %222 = vector.broadcast %221 : vector<1x128xf32> to vector<8x128xf32>
    %223 = arith.addf %220, %222 : vector<8x128xf32>
    %c0_71 = arith.constant 0 : index
    %c0_72 = arith.constant 0 : index
    %224 = vector.load %arg7[%c0_71, %c0_72] : memref<8x128xf32, #tpu.memory_space<vmem>>, vector<8x128xf32>
    tpu.vector_store %arg7[%c0_71, %c0_72], %223 {strides = array<i32>} : memref<8x128xf32, #tpu.memory_space<vmem>>, vector<8x128xf32>,
    return
  }
  func.func @transform_0(%arg0: i32) -> (i32, i32, i32) {
    %c0_i32 = arith.constant 0 : i32
    %c0_i32_0 = arith.constant 0 : i32
    %c0_i32_1 = arith.constant 0 : i32
    return %c0_i32, %arg0, %c0_i32_0 : i32, i32, i32
  }
  func.func @transform_1(%arg0: i32) -> (i32, i32) {
    %c0_i32 = arith.constant 0 : i32
    %c0_i32_0 = arith.constant 0 : i32
    %c0_i32_1 = arith.constant 0 : i32
    return %c0_i32, %c0_i32_0 : i32, i32
  }
  func.func @transform_2(%arg0: i32) -> (i32, i32) {
    %c0_i32 = arith.constant 0 : i32
    %c0_i32_0 = arith.constant 0 : i32
    %c0_i32_1 = arith.constant 0 : i32
    return %c0_i32, %c0_i32_0 : i32, i32
  }
  func.func @transform_3(%arg0: i32) -> (i32, i32) {
    %c0_i32 = arith.constant 0 : i32
    %c0_i32_0 = arith.constant 0 : i32
    %c0_i32_1 = arith.constant 0 : i32
    return %c0_i32, %c0_i32_0 : i32, i32
  }
  func.func @transform_4(%arg0: i32) -> (i32, i32) {
    %c0_i32 = arith.constant 0 : i32
    %c0_i32_0 = arith.constant 0 : i32
    %c0_i32_1 = arith.constant 0 : i32
    return %c0_i32, %c0_i32_0 : i32, i32
  }
  func.func @transform_5(%arg0: i32) -> (i32, i32) {
    %c0_i32 = arith.constant 0 : i32
    %c0_i32_0 = arith.constant 0 : i32
    %c0_i32_1 = arith.constant 0 : i32
    return %c0_i32, %c0_i32_0 : i32, i32
  }
  func.func @transform_6(%arg0: i32) -> (i32, i32) {
    %c0_i32 = arith.constant 0 : i32
    %c0_i32_0 = arith.constant 0 : i32
    return %arg0, %c0_i32 : i32, i32
  }
}

</mosaic_0001>

<bundles_post_ra>
// kernel: _forward.1
= control target key start
LH: loop header
LB: loop body
LE: loop exit
PB: predicated region body
PF: predicated region fallthrough
CT: control target
= control target key end

     0   :  { %s6923_s21 = smov 0   ;;  %s6925_s22 = smov 0   ;;  %s7899_s0 = inlined_call_operand.vmem [shape: f32[8,16,16], index: 0, kind: input, shape index: {}]   ;;  %s7900_s1 = inlined_call_operand.vmem [shape: f32[16,128], index: 1, kind: input, shape index: {}]   ;;  %s7901_s2 = inlined_call_operand.vmem [shape: f32[32,128], index: 2, kind: input, shape index: {}]   ;;  %s7902_s3 = inlined_call_operand.vmem [shape: f32[1,128], index: 3, kind: input, shape index: {}]   ;;  %s7903_s4 = inlined_call_operand.vmem [shape: f32[32,128], index: 4, kind: input, shape index: {}]   ;;  %s7904_s5 = inlined_call_operand.vmem [shape: f32[1,128], index: 5, kind: input, shape index: {}]   ;;  %s7905_s6 = inlined_call_operand.vmem [shape: f32[16,128], index: 6, kind: output, shape index: {}]  }
   0x1   :  { %s6927_s23 = smov 0  }
   0x2 LB: > { %s5767_s24 = sadd.s32 4294967295, %s6882_s23   ;;  %s6940_s25 = sadd.s32 1, %s6882_s23   ;;  %s6882_s23 = sphi %s6927_s23, %s7908_s23   ;;  %s6878_s22 = sphi %s6925_s22, %s7907_s22   ;;  %s6874_s21 = sphi %s6923_s21, %s7906_s21  }
   0x3   : > { %s20_s26 = ssub.s32 %s6882_s23, %s6940_s25  ;;  %s23_s27 = sadd.s32 1, %s6878_s22 }
   0x4   : > { %p21_p0 = scmp.eq.s32.totalorder %s20_s26, 0  ;;  %p30_p1 = scmp.ne.s32.totalorder %s6878_s22, %s6874_s21 }
   0x5   : > { %p31_p2 = scmp.eq.s32.totalorder %s6882_s23, 0  ;;  %p5770_p4 = scmp.ge.s32.totalorder %s6882_s23, 2 }
   0x6   : > { %s6949_s28 = scalar_select %p21_p0, %s6878_s22, %s23_s27  }
   0x7   : > { %p32_p3 = por %p31_p2, %p30_p1  ;;  %202 = sbr.rel (%p5770_p4) target bundleno = 20 (0x14), region = 36 }
   0xc   : > { %205 = sbr.rel (!%p32_p3) target bundleno = 20 (0x14), region = 40  ;;  %s207_s29 = sand.u32 (%p32_p3), 1, %s6878_s22  }
   0xd   : > { %s5772_s30 = sshll.u32 (%p32_p3), %s6882_s23, 3  ;;  %s5771_s7 = sshll.u32 (%p32_p3), %s207_s29, 6 }
   0xe   : > { %s211_s10 = scalar_lea.vmem (%p32_p3), %s7899_s0, %s5772_s30  ;;  %s209_s11 = scalar_lea.vmem (%p32_p3), [#allocation2], %s5771_s7 }
   0xf   : > { %v254_v0 = vld [vmem:[%s211_s10] sm:$0xff] (%p32_p3)  ;;  %v256_v1 = vld [vmem:[%s211_s10 + $0x10] sm:$0xff] (%p32_p3) }
  0x10   : > { %v258_v2 = vld [vmem:[%s211_s10 + $0x20] sm:$0xff] (%p32_p3)  ;;  %255 = vst [vmem:[%s209_s11] sm:$0xff] (%p32_p3), %v254_v0  ;;  %257 = vst [vmem:[%s209_s11 + $0x8] sm:$0xff] (%p32_p3), %v256_v1  ;;  %v260_v3 = vld [vmem:[%s211_s10 + $0x30] sm:$0xff] (%p32_p3) }
  0x11   : > { %259 = vst [vmem:[%s209_s11 + $0x10] sm:$0xff] %v258_v2  ;;  %v262_v4 = vld [vmem:[%s211_s10 + $0x40] sm:$0xff]  ;;  %v264_v5 = vld [vmem:[%s211_s10 + $0x50] sm:$0xff]  ;;  %261 = vst [vmem:[%s209_s11 + $0x18] sm:$0xff] %v260_v3 }
  0x12   : > { %263 = vst [vmem:[%s209_s11 + $0x20] sm:$0xff] %v262_v4  ;;  %265 = vst [vmem:[%s209_s11 + $0x28] sm:$0xff] %v264_v5  ;;  %v266_v6 = vld [vmem:[%s211_s10 + $0x60] sm:$0xff]  ;;  %v268_v7 = vld [vmem:[%s211_s10 + $0x70] sm:$0xff] }
  0x13   : > { %267 = vst [vmem:[%s209_s11 + $0x30] sm:$0xff] %v266_v6  ;;  %269 = vst [vmem:[%s209_s11 + $0x38] sm:$0xff] %v268_v7 }
  0x14 PF: > { %p5773_p5 = scmp.ge.s32.totalorder %s6882_s23, 1  ;;  %p274_p6 = scmp.lt.s32.totalorder %s6882_s23, 3 }
  0x16   : > { %p275_p7 = pnand %p5773_p5, %p274_p6 }
  0x17   : > { %s281_s16 = sand.u32 (!%p275_p7), 1, %s6874_s21   ;;  %s6886_s10 = smov (!%p275_p7), 64  }
  0x18   : > { %278 = sbr.rel (%p275_p7) target bundleno = 6085 (0x17c5), region = 78  ;;  %s5774_s17 = sshll.u32 (!%p275_p7), %s281_s16, 6 }
  0x19   : > { %s6977_s18 = scalar_lea.vmem (!%p275_p7), [#allocation2], %s5774_s17  ;;  %s6887_s11 = smov (!%p275_p7), 32  }
  0x1a   : > { %p309_p8 = scmp.lt.s32.totalorder (!%p275_p7), %s5767_s24, 1 }
  0x1d   : > { %v322_v8 = vld [vmem:[%s7900_s1 + $0x8] sm:$0xff]  ;;  %v321_v9 = vld [vmem:[%s7900_s1] sm:$0xff]  ;;  %vm330_vm0 = vcmask 130048   ;;  %v315_v16 = vld [vmem:[%s6977_s18 + $0x10] sm:$0xff]  ;;  %vm6885_vm1 = vmmov 0   ;;  %vm1119_vm2 = vcmask 261120  }
  0x1e   : > { %v6966_v10 = vand.u32 4294901760, %v322_v8  ;;  %v6968_v11 = vand.u32 4294901760, %v321_v9  ;;  %v313_v14 = vld [vmem:[%s6977_s18] sm:$0xff]  ;;  %v314_v15 = vld [vmem:[%s6977_s18 + $0x8] sm:$0xff]  ;;  %v338_v19 = vsel %vm330_vm0, %v315_v16, 0  ;;  %v316_v20 = vld [vmem:[%s6977_s18 + $0x18] sm:$0xff] }
  0x1f   : > { %v332_v17 = vsel %vm330_vm0, %v313_v14, 0  ;;  %v335_v18 = vsel %vm330_vm0, %v314_v15, 0  ;;  %v317_v21 = vld [vmem:[%s6977_s18 + $0x20] sm:$0xff]  ;;  %v318_v22 = vld [vmem:[%s6977_s18 + $0x28] sm:$0xff]  ;;  %v7001_v27 = vand.u32 4294901760, %v338_v19  ;;  %v341_v28 = vsel %vm330_vm0, %v316_v20, 0 }
  0x20   : > { %6110 = vmatprep.subr.mxu0 %v6966_v10  ;;  %v6972_v12 = vsub.f32 %v322_v8, %v6966_v10  ;;  %v6975_v13 = vsub.f32 %v321_v9, %v6968_v11  ;;  %v6996_v25 = vand.u32 4294901760, %v332_v17  ;;  %v6998_v26 = vand.u32 4294901760, %v335_v18  ;;  %v319_v39 = vld [vmem:[%s6977_s18 + $0x30] sm:$0xff]  ;;  %v320_v40 = vld [vmem:[%s6977_s18 + $0x38] sm:$0xff]  ;;  %s7910_s24 = smov (!%p309_p8, %s5767_s24), 1 }
  0x21   : > { %6111 = vmatpush3.msra.mxu0 %v6966_v10  ;;  %v344_v29 = vsel %vm330_vm0, %v317_v21, 0  ;;  %v347_v30 = vsel %vm330_vm0, %v318_v22, 0  ;;  %v7015_v34 = vand.u32 4294901760, %v341_v28  ;;  %v7021_v36 = vsub.f32 %v338_v19, %v7001_v27  ;;  %v1118_v15 = vld [vmem:[%s7901_s2 + $0x18] sm:$0xff]  ;;  %v1117_v16 = vld [vmem:[%s7901_s2 + $0x10] sm:$0xff]  ;;  %v1116_v19 = vld [vmem:[%s7901_s2 + $0x8] sm:$0xff] }
  0x22   : > { %v6990_v23 = vand.u32 4294901760, %v6972_v12  ;;  %6112 = vmatprep.subr.mxu0 %v6968_v11  ;;  %v6994_v24 = vand.u32 4294901760, %v6975_v13  ;;  %v7011_v33 = vsub.f32 %v332_v17, %v6996_v25  ;;  %6130 = vmatprep.mubr.f32.mxu1 %v6996_v25  ;;  %v7018_v35 = vsub.f32 %v335_v18, %v6998_v26  ;;  %s5775_s26 = sshll.u32 %s7910_s24, 3 }
  0x23   : > { %6113 = vmatpush3.msra.mxu0 %v6968_v11  ;;  %v7023_v37 = vand.u32 4294901760, %v344_v29  ;;  %v7025_v38 = vand.u32 4294901760, %v347_v30  ;;  %v7031_v44 = vsub.f32 %v341_v28, %v7015_v34  ;;  %v444_v46 = vand.u32 4294901760, %v7021_v36  ;;  %s312_s30 = scalar_lea.vmem %s7905_s6, %s5775_s26 }
  0x24   : > { %v534_v31 = vsub.f32 %v6972_v12, %v6990_v23  ;;  %v541_v32 = vsub.f32 %v6975_v13, %v6994_v24  ;;  %6142 = vmatprep.subr.mxu0 %v6972_v12  ;;  %v424_v43 = vand.u32 4294901760, %v7011_v33  ;;  %v434_v45 = vand.u32 4294901760, %v7018_v35 }
  0x25   : > { %v7036_v47 = vsub.f32 %v344_v29, %v7023_v37  ;;  %v7039_v48 = vsub.f32 %v347_v30, %v7025_v38  ;;  %v454_v50 = vand.u32 4294901760, %v7031_v44  ;;  %v350_v51 = vsel %vm330_vm0, %v319_v39, 0 }
  0x26   : > { %v535_v41 = vand.u32 4294901760, %v534_v31  ;;  %v542_v42 = vand.u32 4294901760, %v541_v32  ;;  %v425_v49 = vsub.f32 %v7011_v33, %v424_v43  ;;  %v353_v52 = vsel %vm330_vm0, %v320_v40, 0 }
  0x27   : > { %v435_v53 = vsub.f32 %v7018_v35, %v434_v45  ;;  %v445_v54 = vsub.f32 %v7021_v36, %v444_v46  ;;  %v464_v55 = vand.u32 4294901760, %v7036_v47  ;;  %v474_v56 = vand.u32 4294901760, %v7039_v48 }
  0x28   : > { %6126 = vmatprep.subr.mxu1 %v535_v41  ;;  %v426_v57 = vand.u32 4294901760, %v425_v49  ;;  %v455_v58 = vsub.f32 %v7031_v44, %v454_v50  ;;  %v7056_v59 = vand.u32 4294901760, %v350_v51  ;;  %v7058_v60 = vand.u32 4294901760, %v353_v52 }
  0x29   : > { %6127 = vmatpush3.msra.mxu1 %v535_v41  ;;  %v436_v61 = vand.u32 4294901760, %v435_v53  ;;  %v446_v62 = vand.u32 4294901760, %v445_v54  ;;  %v465_v63 = vsub.f32 %v7036_v47, %v464_v55  ;;  %v475_v3 = vsub.f32 %v7039_v48, %v474_v56 }
  0x2a   : > { %6128 = vmatprep.subr.mxu1 %v542_v42  ;;  %6114 = vmatprep.mubr.f32.mxu0 %v426_v57  ;;  %v7065_v0 = vsub.f32 %v350_v51, %v7056_v59  ;;  %v7068_v1 = vsub.f32 %v353_v52, %v7058_v60  ;;  %v456_v2 = vand.u32 4294901760, %v455_v58  ;;  %v7110_v18 = vand.u32 4294901760, %v1117_v16 }
  0x2b   : > { %6129 = vmatpush3.msra.mxu1 %v542_v42  ;;  %6115 = vmatmul.mubr.f32.vlgmr.msra.gmra.mxu0 %v436_v61  ;;  %v466_v4 = vand.u32 4294901760, %v465_v63  ;;  %v476_v8 = vand.u32 4294901760, %v475_v3  ;;  %v7132_v21 = vand.u32 4294901760, %v1116_v19  ;;  %v6884_v22 = vmov 0.0  }
  0x2c   : > { %6131 = vmatmul.mubr.f32.vlgmr.msra.gmra.mxu1 %v6998_v26  ;;  %6158 = vmatprep.subr.mxu1 %v6966_v10  ;;  %v484_v5 = vand.u32 4294901760, %v7065_v0  ;;  %v494_v6 = vand.u32 4294901760, %v7068_v1  ;;  %v7130_v20 = vsub.f32 %v1117_v16, %v7110_v18 }
  0x2d   : > { %6143 = vmatpush3.msra.mxu0 %v6972_v12  ;;  %6159 = vmatpush3.msra.mxu1 %v6966_v10  ;;  %v7150_v28 = vsub.f32 %v1116_v19, %v7132_v21 }
  0x2e   : > { %6117 = vmatprep.mubr.f32.mxu0 %v446_v62  ;;  %6133 = vmatprep.mubr.f32.mxu1 %v7001_v27  ;;  %v485_v7 = vsub.f32 %v7065_v0, %v484_v5  ;;  %v495_v9 = vsub.f32 %v7068_v1, %v494_v6 }
  0x2f   : > { %6144 = vmatprep.subr.mxu0 %v6975_v13  ;;  %6118 = vmatmul.mubr.f32.gmra.mxu0 %v456_v2  ;;  %v7162_v32 = vand.u32 4294901760, %v7150_v28 }
  0x30   : > { %6134 = vmatmul.mubr.f32.gmra.mxu1 %v7015_v34  ;;  %6120 = vmatprep.mubr.f32.mxu0 %v466_v4  ;;  %v486_v12 = vand.u32 4294901760, %v485_v7  ;;  %v496_v14 = vand.u32 4294901760, %v495_v9 }
  0x31   : > { %6136 = vmatprep.mubr.f32.mxu1 %v7023_v37  ;;  %6145 = vmatpush3.msra.mxu0 %v6975_v13  ;;  %v7095_v13 = vand.u32 4294901760, %v1118_v15 }
  0x32   : > { %6160 = vmatprep.subr.mxu1 %v6968_v11  ;;  %6174 = vmatprep.subr.mxu0 %v6990_v23 }
  0x33   : > { %6121 = vmatmul.mubr.f32.gmra.mxu0 %v476_v8  ;;  %6161 = vmatpush3.msra.mxu1 %v6968_v11  ;;  %v7106_v17 = vsub.f32 %v1118_v15, %v7095_v13 }
  0x34   : > { %6137 = vmatmul.mubr.f32.gmra.mxu1 %v7025_v38  ;;  %6123 = vmatprep.mubr.f32.mxu0 %v486_v12 }
  0x35   : > { %6139 = vmatprep.mubr.f32.mxu1 %v7056_v59  ;;  %6190 = vmatprep.subr.mxu1 %v6966_v10 }
  0x37   : > { %6124 = vmatmul.mubr.f32.gmra.mxu0 %v496_v14 }
  0x38   : > { %6140 = vmatmul.mubr.f32.gmra.mxu1 %v7058_v60  ;;  %6146 = vmatprep.mubr.f32.mxu0 %v7011_v33 }
  0x39   : > { %6162 = vmatprep.mubr.f32.mxu1 %v424_v43 }
  0x3b   : > { %6147 = vmatmul.mubr.f32.vlgmr.msra.gmra.mxu0 %v7018_v35  ;;  %v1244_v35 = vsub.f32 %v7150_v28, %v7162_v32 }
  0x3c   : > { %6163 = vmatmul.mubr.f32.vlgmr.msra.gmra.mxu1 %v434_v45  ;;  %6175 = vmatpush3.msra.mxu0 %v6990_v23  ;;  %v1115_v23 = vld [vmem:[%s7901_s2] sm:$0xff] }
  0x3d   : > { %6191 = vmatpush3.msra.mxu1 %v6966_v10  ;;  %6149 = vmatprep.mubr.f32.mxu0 %v7021_v36  ;;  %v7125_v10 = vand.u32 4294901760, %v7106_v17  ;;  %v7152_v29 = vand.u32 4294901760, %v1115_v23 }
  0x3e   : > { %6165 = vmatprep.mubr.f32.mxu1 %v444_v46  ;;  %6176 = vmatprep.subr.mxu0 %v6994_v24 }
  0x3f   : > { %6177 = vmatpush3.msra.mxu0 %v6994_v24  ;;  %6192 = vmatprep.subr.mxu1 %v6968_v11  ;;  %v1230_v24 = vsub.f32 %v7106_v17, %v7125_v10  ;;  %v7165_v33 = vsub.f32 %v1115_v23, %v7152_v29 }
  0x40   : > { %6166 = vmatmul.mubr.f32.gmra.mxu1 %v454_v50  ;;  %6150 = vmatmul.mubr.f32.gmra.mxu0 %v7031_v44 }
  0x41   : > { %6168 = vmatprep.mubr.f32.mxu1 %v464_v55  ;;  %6152 = vmatprep.mubr.f32.mxu0 %v7036_v47  ;;  %v7156_v30 = vand.u32 4294901760, %v1230_v24  ;;  %v7177_v36 = vand.u32 4294901760, %v7165_v33 }
  0x42   : > { %6193 = vmatpush3.msra.mxu1 %v6968_v11  ;;  %6206 = vmatprep.subr.mxu0 %v6884_v22  ;;  %v7147_v11 = vand.u32 4294901760, %v7130_v20 }
  0x43   : > { %6217 = vmatprep.subr.mxu1 %v6884_v22  ;;  %v1251_v39 = vsub.f32 %v7165_v33, %v7177_v36 }
  0x44   : > { %6169 = vmatmul.mubr.f32.gmra.mxu1 %v474_v56  ;;  %6153 = vmatmul.mubr.f32.gmra.mxu0 %v7039_v48  ;;  %v1237_v31 = vsub.f32 %v7130_v20, %v7147_v11 }
  0x45   : > { %6171 = vmatprep.mubr.f32.mxu1 %v484_v5  ;;  %6155 = vmatprep.mubr.f32.mxu0 %v7065_v0 }
  0x48   : > { %6172 = vmatmul.mubr.f32.gmra.mxu1 %v494_v6  ;;  %6156 = vmatmul.mubr.f32.gmra.mxu0 %v7068_v1 }
  0x49   : > { %6194 = vmatprep.mubr.f32.mxu1 %v6996_v25  ;;  %6178 = vmatprep.mubr.f32.mxu0 %v6996_v25  ;;  %v7172_v25 = vand.u32 4294901760, %v1237_v31 }
  0x4c   : > { %6195 = vmatmul.mubr.f32.vlgmr.msra.gmra.mxu1 %v6998_v26  ;;  %6179 = vmatmul.mubr.f32.vlgmr.msra.gmra.mxu0 %v6998_v26  ;;  %v7187_v26 = vand.u32 4294901760, %v1244_v35 }
  0x4d   : > { %6218 = vmatpush3.msra.mxu1 %v7156_v30  ;;  %6207 = vmatpush3.msra.mxu0 %v7095_v13 }
  0x4e   : > { %6181 = vmatprep.mubr.f32.mxu0 %v7001_v27  ;;  %6197 = vmatprep.mubr.f32.mxu1 %v7001_v27  ;;  %v7199_v27 = vand.u32 4294901760, %v1251_v39 }
  0x4f   : > { %6208 = vmatprep.subr.mxu0 %v6884_v22  ;;  %6219 = vmatprep.subr.mxu1 %v6884_v22 }
  0x50   : > { %6198 = vmatmul.mubr.f32.gmra.mxu1 %v7015_v34  ;;  %6209 = vmatpush3.msra.mxu0 %v7110_v18 }
  0x51   : > { %6182 = vmatmul.mubr.f32.gmra.mxu0 %v7015_v34  ;;  %6220 = vmatpush3.msra.mxu1 %v7172_v25  ;;  %v7283_v34 = vld [vmem:[%s7902_s3] ss:$0 sm:$0xff] }
  0x52   : > { %6184 = vmatprep.mubr.f32.mxu0 %v7023_v37  ;;  %6200 = vmatprep.mubr.f32.mxu1 %v7023_v37 }
  0x53   : > { %6210 = vmatprep.subr.mxu0 %v6884_v22  ;;  %6221 = vmatprep.subr.mxu1 %v6884_v22 }
  0x54   : > { %6201 = vmatmul.mubr.f32.gmra.mxu1 %v7025_v38  ;;  %6211 = vmatpush3.msra.mxu0 %v7132_v21 }
  0x55   : > { %6185 = vmatmul.mubr.f32.gmra.mxu0 %v7025_v38  ;;  %6222 = vmatpush3.msra.mxu1 %v7187_v26 }
  0x56   : > { %6187 = vmatprep.mubr.f32.mxu0 %v7056_v59  ;;  %6203 = vmatprep.mubr.f32.mxu1 %v7056_v59 }
  0x57   : > { %6212 = vmatprep.subr.mxu0 %v6884_v22  ;;  %6223 = vmatprep.subr.mxu1 %v6884_v22 }
  0x58   : > { %6204 = vmatmul.mubr.f32.gmra.mxu1 %v7058_v60  ;;  %6213 = vmatpush3.msra.mxu0 %v7152_v29 }
  0x59   : > { %6188 = vmatmul.mubr.f32.gmra.mxu0 %v7058_v60  ;;  %6224 = vmatpush3.msra.mxu1 %v7199_v27 }
  0x5a   : > { %6214 = vmatprep.mubr.msk.f32.mxu0 %vm6885_vm1, %v6884_v22  ;;  %6225 = vmatprep.mubr.msk.f32.mxu1 %vm6885_vm1, %v6884_v22 }
  0x5b   : > { %6228 = vmatprep.subr.mxu0 %v6884_v22  ;;  %6239 = vmatprep.subr.mxu1 %v6884_v22 }
  0x5c   : > { %6226 = vmatmul.mubr.f32.vlgmr.msra.gmra.mxu1 %v6884_v22 }
  0x5d   : > { %6215 = vmatmul.mubr.f32.vlgmr.msra.gmra.mxu0 %v6884_v22  ;;  %6240 = vmatpush3.msra.mxu1 %v7095_v13 }
  0x5e   : > { %6229 = vmatpush3.msra.mxu0 %v7106_v17  ;;  %6241 = vmatprep.subr.mxu1 %v6884_v22 }
  0x5f   : > { %6230 = vmatprep.subr.mxu0 %v6884_v22  ;;  %6242 = vmatpush3.msra.mxu1 %v7110_v18 }
  0x60   : > { %6231 = vmatpush3.msra.mxu0 %v7130_v20  ;;  %6243 = vmatprep.subr.mxu1 %v6884_v22 }
  0x61   : > { %6232 = vmatprep.subr.mxu0 %v6884_v22  ;;  %6244 = vmatpush3.msra.mxu1 %v7132_v21 }
  0x62   : > { %6233 = vmatpush3.msra.mxu0 %v7150_v28  ;;  %6245 = vmatprep.subr.mxu1 %v6884_v22 }
  0x63   : > { %6234 = vmatprep.subr.mxu0 %v6884_v22  ;;  %6236 = vmatprep.mubr.msk.f32.mxu0 %vm6885_vm1, %v6884_v22 }
  0x64   : > { %6235 = vmatpush3.msra.mxu0 %v7165_v33  ;;  %6246 = vmatpush3.msra.mxu1 %v7152_v29 }
  0x65   : > { %6237 = vmatmul.mubr.f32.vlgmr.msra.gmra.mxu0 %v6884_v22  ;;  %6247 = vmatprep.mubr.msk.f32.mxu1 %vm6885_vm1, %v6884_v22 }
  0x66   : > { %6250 = vmatprep.subr.mxu0 %v6884_v22  ;;  %6261 = vmatprep.subr.mxu1 %v6884_v22 }
  0x67   : > { %6248 = vmatmul.mubr.f32.vlgmr.msra.gmra.mxu1 %v6884_v22  ;;  %6251 = vmatpush3.msra.mxu0 %v7125_v10 }
  0x68   : > { %6262 = vmatpush3.msra.mxu1 %v7095_v13  ;;  %6252 = vmatprep.subr.mxu0 %v6884_v22 }
  0x69   : > { %6263 = vmatprep.subr.mxu1 %v6884_v22  ;;  %6253 = vmatpush3.msra.mxu0 %v7147_v11 }
  0x6a   : > { %6264 = vmatpush3.msra.mxu1 %v7110_v18  ;;  %6254 = vmatprep.subr.mxu0 %v6884_v22 }
  0x6b   : > { %6265 = vmatprep.subr.mxu1 %v6884_v22  ;;  %6255 = vmatpush3.msra.mxu0 %v7162_v32 }
  0x6c   : > { %6266 = vmatpush3.msra.mxu1 %v7132_v21  ;;  %6256 = vmatprep.subr.mxu0 %v6884_v22 }
  0x6d   : > { %6267 = vmatprep.subr.mxu1 %v6884_v22  ;;  %6257 = vmatpush3.msra.mxu0 %v7177_v36 }
  0x6e   : > { %6258 = vmatprep.mubr.msk.f32.mxu0 %vm6885_vm1, %v6884_v22  ;;  %6268 = vmatpush3.msra.mxu1 %v7152_v29 }
  0x6f   : > { %6269 = vmatprep.mubr.msk.f32.mxu1 %vm6885_vm1, %v6884_v22  ;;  %6259 = vmatmul.mubr.f32.vlgmr.msra.gmra.mxu0 %v6884_v22 }
  0x70   : > { %6270 = vmatmul.mubr.f32.vlgmr.msra.gmra.mxu1 %v6884_v22  ;;  %6283 = vmatprep.subr.mxu1 %v6884_v22 }
  0x71   : > { %6284 = vmatpush3.msra.mxu1 %v7156_v30  ;;  %6272 = vmatprep.subr.mxu0 %v6884_v22 }
  0x72   : > { %6285 = vmatprep.subr.mxu1 %v6884_v22  ;;  %6291 = vmatprep.mubr.msk.f32.mxu1 %vm6885_vm1, %v6884_v22 }
  0x73   : > { %6286 = vmatpush3.msra.mxu1 %v7172_v25  ;;  %6273 = vmatpush3.msra.mxu0 %v7095_v13 }
  0x74   : > { %6287 = vmatprep.subr.mxu1 %v6884_v22  ;;  %6274 = vmatprep.subr.mxu0 %v6884_v22 }
  0x75   : > { %6288 = vmatpush3.msra.mxu1 %v7187_v26  ;;  %6275 = vmatpush3.msra.mxu0 %v7110_v18 }
  0x76   : > { %6289 = vmatprep.subr.mxu1 %v6884_v22  ;;  %6276 = vmatprep.subr.mxu0 %v6884_v22 }
  0x77   : > { %6290 = vmatpush3.msra.mxu1 %v7199_v27  ;;  %6277 = vmatpush3.msra.mxu0 %v7132_v21 }
  0x78   : > { %6305 = vmatprep.subr.mxu1 %v6884_v22  ;;  %6278 = vmatprep.subr.mxu0 %v6884_v22 }
  0x79   : > { %6279 = vmatpush3.msra.mxu0 %v7152_v29  ;;  %6280 = vmatprep.mubr.msk.f32.mxu0 %vm6885_vm1, %v6884_v22 }
  0x7a   : > { %6294 = vmatprep.subr.mxu0 %v6884_v22 }
  0xeb   : > { %v6116_v38 = vpop.f32.mrf.mxu0 }
  0xec   : > { %v6132_v37 = vpop.f32.mrf.mxu1  ;;  %v439_v40 = vadd.f32 %v6116_v38, %v7283_v34 }
  0xed   : > { %v7288_v42 = vpop.f32.mrf.mxu0 }
  0xee   : > { %v7286_v41 = vpop.f32.mrf.mxu1  ;;  %v586_v43 = vadd.f32 %v6132_v37, %v439_v40 }
  0xef   : > { %v6119_v45 = vpop.f32.mrf.mxu0 }
  0xf0   : > { %v6135_v44 = vpop.f32.mrf.mxu1  ;;  %v459_v46 = vadd.f32 %v6119_v45, %v7283_v34 }
  0xf1   : > { %v448_v48 = vpop.f32.mrf.mxu0 }
  0xf2   : > { %v591_v47 = vpop.f32.mrf.mxu1  ;;  %v598_v49 = vadd.f32 %v6135_v44, %v459_v46  ;;  %v449_v50 = vadd.f32 %v7283_v34, %v448_v48 }
  0xf3   : > { %v6122_v52 = vpop.f32.mrf.mxu0 }
  0xf4   : > { %v6138_v51 = vpop.f32.mrf.mxu1  ;;  %v592_v53 = vadd.f32 %v591_v47, %v449_v50  ;;  %v479_v54 = vadd.f32 %v6122_v52, %v7283_v34 }
  0xf5   : > { %v468_v56 = vpop.f32.mrf.mxu0 }
  0xf6   : > { %v603_v55 = vpop.f32.mrf.mxu1  ;;  %v610_v57 = vadd.f32 %v6138_v51, %v479_v54  ;;  %v469_v58 = vadd.f32 %v7283_v34, %v468_v56 }
  0xf7   : > { %v6125_v60 = vpop.f32.mrf.mxu0 }
  0xf8   : > { %v6141_v59 = vpop.f32.mrf.mxu1  ;;  %v604_v61 = vadd.f32 %v603_v55, %v469_v58  ;;  %v499_v62 = vadd.f32 %v6125_v60, %v7283_v34 }
  0xf9   : > { %v488_v0 = vpop.f32.mrf.mxu0 }
  0xfa   : > { %v615_v63 = vpop.f32.mrf.mxu1  ;;  %v622_v1 = vadd.f32 %v6141_v59, %v499_v62  ;;  %v489_v2 = vadd.f32 %v7283_v34, %v488_v0 }
  0xfb   : > { %v6148_v4 = vpop.f32.mrf.mxu0 }
  0xfc   : > { %v6164_v3 = vpop.f32.mrf.mxu1  ;;  %v616_v5 = vadd.f32 %v615_v63, %v489_v2  ;;  %v705_v6 = vadd.f32 %v6148_v4, %v586_v43 }
  0xfd   : > { %v7298_v8 = vpop.f32.mrf.mxu0 }
  0xfe   : > { %v7296_v7 = vpop.f32.mrf.mxu1  ;;  %v830_v9 = vadd.f32 %v6164_v3, %v705_v6 }
 0x100   : > { %v6167_v12 = vpop.f32.mrf.mxu1  ;;  %v6151_v14 = vpop.f32.mrf.mxu0 }
 0x101   : > { %v719_v15 = vadd.f32 %v6151_v14, %v598_v49 }
 0x102   : > { %v837_v16 = vpop.f32.mrf.mxu1  ;;  %v711_v19 = vpop.f32.mrf.mxu0 }
 0x103   : > { %v846_v23 = vadd.f32 %v6167_v12, %v719_v15  ;;  %v712_v24 = vadd.f32 %v711_v19, %v592_v53 }
 0x104   : > { %v6170_v31 = vpop.f32.mrf.mxu1  ;;  %v6154_v35 = vpop.f32.mrf.mxu0 }
 0x105   : > { %v838_v39 = vadd.f32 %v837_v16, %v712_v24  ;;  %v733_v37 = vadd.f32 %v6154_v35, %v610_v57 }
 0x106   : > { %v853_v38 = vpop.f32.mrf.mxu1  ;;  %v725_v40 = vpop.f32.mrf.mxu0 }
 0x107   : > { %v862_v44 = vadd.f32 %v6170_v31, %v733_v37  ;;  %v726_v43 = vadd.f32 %v725_v40, %v604_v61 }
 0x108   : > { %v6173_v45 = vpop.f32.mrf.mxu1  ;;  %v6157_v46 = vpop.f32.mrf.mxu0 }
 0x109   : > { %v854_v47 = vadd.f32 %v853_v38, %v726_v43  ;;  %v747_v48 = vadd.f32 %v6157_v46, %v622_v1  ;;  %v429_v46 = vadd.f32 %v7283_v34, %v7288_v42 }
 0x10a   : > { %v869_v50 = vpop.f32.mrf.mxu1  ;;  %v739_v51 = vpop.f32.mrf.mxu0 }
 0x10b   : > { %v878_v52 = vadd.f32 %v6173_v45, %v747_v48  ;;  %v740_v49 = vadd.f32 %v739_v51, %v616_v5  ;;  %v580_v48 = vadd.f32 %v7286_v41, %v429_v46 }
 0x10c   : > { %v6196_v54 = vpop.f32.mrf.mxu1  ;;  %v6180_v55 = vpop.f32.mrf.mxu0 }
 0x10d   : > { %v870_v56 = vadd.f32 %v869_v50, %v740_v49  ;;  %v961_v53 = vadd.f32 %v6180_v55, %v830_v9 }
 0x10e   : > { %v1069_v58 = vpop.f32.mrf.mxu1  ;;  %v954_v59 = vpop.f32.mrf.mxu0 }
 0x10f   : > { %v7300_v60 = vadd.f32 %v6196_v54, %v961_v53 }
 0x110   : > { %v6199_v57 = vpop.f32.mrf.mxu1 }
 0x111   : > { %v6183_v62 = vpop.f32.mrf.mxu0 }
 0x112   : > { %v973_v63 = vadd.f32 %v6183_v62, %v846_v23  ;;  %v1081_v61 = vpop.f32.mrf.mxu1 }
 0x113   : > { %v966_v0 = vpop.f32.mrf.mxu0 }
 0x114   : > { %v7302_v2 = vadd.f32 %v6199_v57, %v973_v63  ;;  %v967_v1 = vadd.f32 %v966_v0, %v838_v39  ;;  %v6202_v3 = vpop.f32.mrf.mxu1 }
 0x115   : > { %v6186_v4 = vpop.f32.mrf.mxu0 }
 0x116   : > { %v7304_v6 = vadd.f32 %v1081_v61, %v967_v1  ;;  %v985_v5 = vadd.f32 %v6186_v4, %v862_v44  ;;  %v1093_v12 = vpop.f32.mrf.mxu1 }
 0x117   : > { %v978_v14 = vpop.f32.mrf.mxu0 }
 0x118   : > { %v7306_v9 = vadd.f32 %v6202_v3, %v985_v5  ;;  %v979_v15 = vadd.f32 %v978_v14, %v854_v47  ;;  %v6205_v16 = vpop.f32.mrf.mxu1 }
 0x119   : > { %v6189_v19 = vpop.f32.mrf.mxu0 }
 0x11a   : > { %v7308_v24 = vadd.f32 %v1093_v12, %v979_v15  ;;  %v997_v23 = vadd.f32 %v6189_v19, %v878_v52  ;;  %v1105_v31 = vpop.f32.mrf.mxu1  ;;  %v698_v52 = vadd.f32 %v7298_v8, %v580_v48 }
 0x11b   : > { %v990_v35 = vpop.f32.mrf.mxu0 }
 0x11c   : > { %v7310_v37 = vadd.f32 %v6205_v16, %v997_v23  ;;  %v991_v39 = vadd.f32 %v990_v35, %v870_v56  ;;  %v1289_v38 = vpop.f32.mrf.mxu1  ;;  %v822_v56 = vadd.f32 %v7296_v7, %v698_v52 }
 0x11d   : > { %v1198_v40 = vpop.f32.mrf.mxu0 }
 0x11e   : > { %v7312_v43 = vadd.f32 %v1105_v31, %v991_v39  ;;  %v6227_v44 = vpop.f32.mrf.mxu1  ;;  %v1290_v49 = vadd.f32 %v1289_v38, %v1198_v40  ;;  %v955_v53 = vadd.f32 %v954_v59, %v822_v56 }
 0x11f   : > { %v6216_v45 = vpop.f32.mrf.mxu0 }
 0x120   : > { %v1070_v1 = vadd.f32 %v1069_v58, %v955_v53 }
 0x125   : > { %v1369_v47 = vpop.f32.mrf.mxu0 }
 0x126   : > { %v1370_v55 = vadd.f32 %v1369_v47, %v1290_v49 }
 0x127   : > { %v1446_v50 = vpop.f32.mrf.mxu1  ;;  %v6238_v51 = vpop.f32.mrf.mxu0 }
 0x128   : > { %v1447_v57 = vadd.f32 %v1446_v50, %v1370_v55 }
 0x129   : > { %v6249_v54 = vpop.f32.mrf.mxu1 }
 0x12f   : > { %v1529_v62 = vpop.f32.mrf.mxu0 }
 0x130   : > { %v1530_v63 = vadd.f32 %v1529_v62, %v1447_v57  ;;  %v1604_v61 = vpop.f32.mrf.mxu1 }
 0x131   : > { %v6260_v0 = vpop.f32.mrf.mxu0 }
 0x132   : > { %v1605_v34 = vadd.f32 %v1604_v61, %v1530_v63  ;;  %v6271_v42 = vpop.f32.mrf.mxu1 }
 0x134   : > { %v1608_v3 = vadd.f32 %v1605_v34, %v1070_v1 }
 0x136   : > { %6828 = vtanh.f32 %v1608_v3 }
 0x143   : > { %v6829_v41 = vpop.eup %6828 }
 0x144   : > { %1614 = vrot.lane.b32.xlu0 %v6829_v41, %s6886_s10  ;;  %v1610_v8 = vmul.f32 0.5, %v6829_v41 }
 0x146   : > { %v1611_v4 = vadd.f32 0.5, %v1610_v8 }
 0x148   : > { %v1612_v7 = vmul.f32 0.0, %v1611_v4 }
 0x1b6   : > { %v1615_v5 = vpop.permute.xlu0 %1614 }
 0x1b7   : > { %v1617_v12 = vmul.f32 %v1615_v5, %v1611_v4 }
 0x1b9   : > { %1619 = vrot.lane.b32.xlu0 %v1617_v12, %s6887_s11 }
 0x22b   : > { %v1620_v59 = vpop.permute.xlu0 %1619 }
 0x22c   : > { %v7321_v14 = vadd.f32 %v1620_v59, %v1612_v7 }
 0x22e   : > { %6830 = vtanh.f32 %v7321_v14 }
 0x23b   : > { %v6831_v58 = vpop.eup %6830 }
 0x23c   : > { %1625 = vrot.lane.b32.xlu1 %v6831_v58, %s6886_s10 }
 0x2ae   : > { %v1626_v15 = vpop.permute.xlu1 %1625 }
 0x2af   : > { %v1628_v16 = vmul.f32 %v1626_v15, %v1611_v4 }
 0x2b1   : > { %1630 = vrot.lane.b32.xlu1 %v1628_v16, %s6887_s11 }
 0x323   : > { %v1631_v19 = vpop.permute.xlu1 %1630 }
 0x324   : > { %v1632_v23 = vsel %vm1119_vm2, %v1631_v19, 0 }
 0x325   : > { %v1703_v31 = vand.u32 4294901760, %v1632_v23 }
 0x327   : > { %v1704_v35 = vsub.f32 %v1632_v23, %v1703_v31  ;;  %6292 = vmatmul.mubr.f32.vlgmr.msra.gmra.mxu1 %v1703_v31 }
 0x328   : > { %6306 = vmatpush3.msra.mxu1 %v7095_v13  ;;  %6313 = vmatprep.mubr.msk.f32.mxu1 %vm6885_vm1, %v6884_v22 }
 0x329   : > { %v1705_v39 = vand.u32 4294901760, %v1704_v35  ;;  %6307 = vmatprep.subr.mxu1 %v6884_v22 }
 0x32a   : > { %6308 = vmatpush3.msra.mxu1 %v7110_v18 }
 0x32b   : > { %v1706_v38 = vsub.f32 %v1704_v35, %v1705_v39  ;;  %6309 = vmatprep.subr.mxu1 %v6884_v22 }
 0x32c   : > { %6310 = vmatpush3.msra.mxu1 %v7132_v21 }
 0x32d   : > { %v1707_v40 = vand.u32 4294901760, %v1706_v38  ;;  %6311 = vmatprep.subr.mxu1 %v6884_v22 }
 0x32e   : > { %6312 = vmatpush3.msra.mxu1 %v7152_v29 }
 0x32f   : > { %6314 = vmatmul.mubr.f32.vlgmr.msra.gmra.mxu1 %v1705_v39  ;;  %6327 = vmatprep.subr.mxu1 %v6884_v22 }
 0x330   : > { %6281 = vmatmul.mubr.f32.vlgmr.msra.gmra.mxu0 %v1707_v40  ;;  %6328 = vmatpush3.msra.mxu1 %v7095_v13 }
 0x331   : > { %6295 = vmatpush3.msra.mxu0 %v7106_v17  ;;  %6329 = vmatprep.subr.mxu1 %v6884_v22 }
 0x332   : > { %6296 = vmatprep.subr.mxu0 %v6884_v22  ;;  %6330 = vmatpush3.msra.mxu1 %v7110_v18 }
 0x333   : > { %6297 = vmatpush3.msra.mxu0 %v7130_v20  ;;  %6331 = vmatprep.subr.mxu1 %v6884_v22 }
 0x334   : > { %6298 = vmatprep.subr.mxu0 %v6884_v22  ;;  %6332 = vmatpush3.msra.mxu1 %v7132_v21 }
 0x335   : > { %6299 = vmatpush3.msra.mxu0 %v7150_v28  ;;  %6333 = vmatprep.subr.mxu1 %v6884_v22 }
 0x336   : > { %6300 = vmatprep.subr.mxu0 %v6884_v22  ;;  %6302 = vmatprep.mubr.msk.f32.mxu0 %vm6885_vm1, %v6884_v22 }
 0x337   : > { %6301 = vmatpush3.msra.mxu0 %v7165_v33  ;;  %6334 = vmatpush3.msra.mxu1 %v7152_v29 }
 0x338   : > { %6335 = vmatprep.mubr.msk.f32.mxu1 %vm6885_vm1, %v6884_v22  ;;  %6303 = vmatmul.mubr.f32.vlgmr.msra.gmra.mxu0 %v1704_v35 }
 0x339   : > { %6316 = vmatprep.subr.mxu0 %v6884_v22  ;;  %6336 = vmatmul.mubr.f32.vlgmr.msra.gmra.mxu1 %v1703_v31 }
 0x33a   : > { %6317 = vmatpush3.msra.mxu0 %v7125_v10  ;;  %6324 = vmatprep.mubr.msk.f32.mxu0 %vm6885_vm1, %v6884_v22 }
 0x33b   : > { %6318 = vmatprep.subr.mxu0 %v6884_v22  ;;  %6349 = vmatprep.subr.mxu1 %v6884_v22 }
 0x33c   : > { %6319 = vmatpush3.msra.mxu0 %v7147_v11  ;;  %6350 = vmatpush3.msra.mxu1 %v7156_v30 }
 0x33d   : > { %6320 = vmatprep.subr.mxu0 %v6884_v22  ;;  %6351 = vmatprep.subr.mxu1 %v6884_v22 }
 0x33e   : > { %6321 = vmatpush3.msra.mxu0 %v7162_v32  ;;  %6352 = vmatpush3.msra.mxu1 %v7172_v25 }
 0x33f   : > { %6322 = vmatprep.subr.mxu0 %v6884_v22  ;;  %6353 = vmatprep.subr.mxu1 %v6884_v22 }
 0x340   : > { %6323 = vmatpush3.msra.mxu0 %v7177_v36  ;;  %6354 = vmatpush3.msra.mxu1 %v7187_v26 }
 0x341   : > { %6325 = vmatmul.mubr.f32.vlgmr.msra.gmra.mxu0 %v1703_v31  ;;  %6355 = vmatprep.subr.mxu1 %v6884_v22 }
 0x342   : > { %6356 = vmatpush3.msra.mxu1 %v7199_v27  ;;  %6338 = vmatprep.subr.mxu0 %v6884_v22 }
 0x343   : > { %6357 = vmatprep.mubr.msk.f32.mxu1 %vm6885_vm1, %v6884_v22  ;;  %6371 = vmatprep.subr.mxu1 %v6884_v22 }
 0x344   : > { %6339 = vmatpush3.msra.mxu0 %v7095_v13  ;;  %6346 = vmatprep.mubr.msk.f32.mxu0 %vm6885_vm1, %v6884_v22 }
 0x345   : > { %6340 = vmatprep.subr.mxu0 %v6884_v22 }
 0x346   : > { %6341 = vmatpush3.msra.mxu0 %v7110_v18 }
 0x347   : > { %6342 = vmatprep.subr.mxu0 %v6884_v22 }
 0x348   : > { %6343 = vmatpush3.msra.mxu0 %v7132_v21 }
 0x349   : > { %6344 = vmatprep.subr.mxu0 %v6884_v22 }
 0x34a   : > { %6345 = vmatpush3.msra.mxu0 %v7152_v29 }
 0x34b   : > { %6360 = vmatprep.subr.mxu0 %v6884_v22 }
 0x3e7   : > { %v1800_v44 = vpop.f32.mrf.mxu1 }
 0x3e9   : > { %v6293_v45 = vpop.f32.mrf.mxu1 }
 0x3ef   : > { %v1957_v46 = vpop.f32.mrf.mxu1 }
 0x3f0   : > { %v1709_v47 = vpop.f32.mrf.mxu0 }
 0x3f1   : > { %v6315_v48 = vpop.f32.mrf.mxu1  ;;  %v1801_v49 = vadd.f32 %v1800_v44, %v1709_v47 }
 0x3f2   : > { %v6282_v50 = vpop.f32.mrf.mxu0 }
 0x3f8   : > { %v1880_v51 = vpop.f32.mrf.mxu0 }
 0x3f9   : > { %v2115_v52 = vpop.f32.mrf.mxu1  ;;  %v1881_v56 = vadd.f32 %v1880_v51, %v1801_v49 }
 0x3fa   : > { %v6304_v54 = vpop.f32.mrf.mxu0 }
 0x3fb   : > { %v6337_v55 = vpop.f32.mrf.mxu1  ;;  %v1958_v53 = vadd.f32 %v1957_v46, %v1881_v56 }
 0x401   : > { %v2040_v57 = vpop.f32.mrf.mxu0 }
 0x402   : > { %v2041_v62 = vadd.f32 %v2040_v57, %v1958_v53 }
 0x403   : > { %v6326_v63 = vpop.f32.mrf.mxu0 }
 0x404   : > { %v2116_v61 = vadd.f32 %v2115_v52, %v2041_v62 }
 0x406   : > { %v2119_v0 = vadd.f32 %v2116_v61, %v7300_v60 }
 0x408   : > { %6832 = vtanh.f32 %v2119_v0 }
 0x415   : > { %v6833_v1 = vpop.eup %6832 }
 0x416   : > { %2125 = vrot.lane.b32.xlu0 %v6833_v1, %s6886_s10  ;;  %v2121_v34 = vmul.f32 0.5, %v6833_v1 }
 0x418   : > { %v2122_v42 = vadd.f32 0.5, %v2121_v34 }
 0x41a   : > { %v2123_v8 = vmul.f32 %v2122_v42, %v7321_v14 }
 0x488   : > { %v2126_v3 = vpop.permute.xlu0 %2125 }
 0x489   : > { %v2128_v41 = vmul.f32 %v2126_v3, %v2122_v42 }
 0x48b   : > { %2130 = vrot.lane.b32.xlu1 %v2128_v41, %s6887_s11 }
 0x4fd   : > { %v2131_v4 = vpop.permute.xlu1 %2130 }
 0x4fe   : > { %v7391_v5 = vadd.f32 %v2131_v4, %v2123_v8 }
 0x500   : > { %6834 = vtanh.f32 %v7391_v5 }
 0x50d   : > { %v6835_v12 = vpop.eup %6834 }
 0x50e   : > { %2136 = vrot.lane.b32.xlu0 %v6835_v12, %s6886_s10 }
 0x580   : > { %v2137_v60 = vpop.permute.xlu0 %2136 }
 0x581   : > { %v2139_v7 = vmul.f32 %v2137_v60, %v2122_v42 }
 0x583   : > { %2141 = vrot.lane.b32.xlu1 %v2139_v7, %s6887_s11 }
 0x5f5   : > { %v2142_v59 = vpop.permute.xlu1 %2141 }
 0x5f6   : > { %v2143_v58 = vsel %vm1119_vm2, %v2142_v59, 0 }
 0x5f7   : > { %v2214_v15 = vand.u32 4294901760, %v2143_v58 }
 0x5f9   : > { %v2215_v16 = vsub.f32 %v2143_v58, %v2214_v15  ;;  %6358 = vmatmul.mubr.f32.vlgmr.msra.gmra.mxu1 %v2214_v15 }
 0x5fa   : > { %6372 = vmatpush3.msra.mxu1 %v7095_v13  ;;  %6379 = vmatprep.mubr.msk.f32.mxu1 %vm6885_vm1, %v6884_v22 }
 0x5fb   : > { %v2216_v14 = vand.u32 4294901760, %v2215_v16  ;;  %6373 = vmatprep.subr.mxu1 %v6884_v22 }
 0x5fc   : > { %6374 = vmatpush3.msra.mxu1 %v7110_v18 }
 0x5fd   : > { %v2217_v19 = vsub.f32 %v2215_v16, %v2216_v14  ;;  %6375 = vmatprep.subr.mxu1 %v6884_v22 }
 0x5fe   : > { %6376 = vmatpush3.msra.mxu1 %v7132_v21 }
 0x5ff   : > { %v2218_v23 = vand.u32 4294901760, %v2217_v19  ;;  %6377 = vmatprep.subr.mxu1 %v6884_v22 }
 0x600   : > { %6378 = vmatpush3.msra.mxu1 %v7152_v29 }
 0x601   : > { %6380 = vmatmul.mubr.f32.vlgmr.msra.gmra.mxu1 %v2216_v14  ;;  %6393 = vmatprep.subr.mxu1 %v6884_v22 }
 0x602   : > { %6347 = vmatmul.mubr.f32.vlgmr.msra.gmra.mxu0 %v2218_v23  ;;  %6394 = vmatpush3.msra.mxu1 %v7095_v13 }
 0x603   : > { %6361 = vmatpush3.msra.mxu0 %v7106_v17  ;;  %6395 = vmatprep.subr.mxu1 %v6884_v22 }
 0x604   : > { %6362 = vmatprep.subr.mxu0 %v6884_v22  ;;  %6396 = vmatpush3.msra.mxu1 %v7110_v18 }
 0x605   : > { %6363 = vmatpush3.msra.mxu0 %v7130_v20  ;;  %6397 = vmatprep.subr.mxu1 %v6884_v22 }
 0x606   : > { %6364 = vmatprep.subr.mxu0 %v6884_v22  ;;  %6398 = vmatpush3.msra.mxu1 %v7132_v21 }
 0x607   : > { %6365 = vmatpush3.msra.mxu0 %v7150_v28  ;;  %6399 = vmatprep.subr.mxu1 %v6884_v22 }
 0x608   : > { %6366 = vmatprep.subr.mxu0 %v6884_v22  ;;  %6368 = vmatprep.mubr.msk.f32.mxu0 %vm6885_vm1, %v6884_v22 }
 0x609   : > { %6367 = vmatpush3.msra.mxu0 %v7165_v33  ;;  %6400 = vmatpush3.msra.mxu1 %v7152_v29 }
 0x60a   : > { %6401 = vmatprep.mubr.msk.f32.mxu1 %vm6885_vm1, %v6884_v22  ;;  %6369 = vmatmul.mubr.f32.vlgmr.msra.gmra.mxu0 %v2215_v16 }
 0x60b   : > { %6382 = vmatprep.subr.mxu0 %v6884_v22  ;;  %6402 = vmatmul.mubr.f32.vlgmr.msra.gmra.mxu1 %v2214_v15 }
 0x60c   : > { %6383 = vmatpush3.msra.mxu0 %v7125_v10  ;;  %6390 = vmatprep.mubr.msk.f32.mxu0 %vm6885_vm1, %v6884_v22 }
 0x60d   : > { %6384 = vmatprep.subr.mxu0 %v6884_v22  ;;  %6415 = vmatprep.subr.mxu1 %v6884_v22 }
 0x60e   : > { %6385 = vmatpush3.msra.mxu0 %v7147_v11  ;;  %6416 = vmatpush3.msra.mxu1 %v7156_v30 }
 0x60f   : > { %6386 = vmatprep.subr.mxu0 %v6884_v22  ;;  %6417 = vmatprep.subr.mxu1 %v6884_v22 }
 0x610   : > { %6387 = vmatpush3.msra.mxu0 %v7162_v32  ;;  %6418 = vmatpush3.msra.mxu1 %v7172_v25 }
 0x611   : > { %6388 = vmatprep.subr.mxu0 %v6884_v22  ;;  %6419 = vmatprep.subr.mxu1 %v6884_v22 }
 0x612   : > { %6389 = vmatpush3.msra.mxu0 %v7177_v36  ;;  %6420 = vmatpush3.msra.mxu1 %v7187_v26 }
 0x613   : > { %6391 = vmatmul.mubr.f32.vlgmr.msra.gmra.mxu0 %v2214_v15  ;;  %6421 = vmatprep.subr.mxu1 %v6884_v22 }
 0x614   : > { %6422 = vmatpush3.msra.mxu1 %v7199_v27  ;;  %6404 = vmatprep.subr.mxu0 %v6884_v22 }
 0x615   : > { %6423 = vmatprep.mubr.msk.f32.mxu1 %vm6885_vm1, %v6884_v22  ;;  %6437 = vmatprep.subr.mxu1 %v6884_v22 }
 0x616   : > { %6405 = vmatpush3.msra.mxu0 %v7095_v13  ;;  %6412 = vmatprep.mubr.msk.f32.mxu0 %vm6885_vm1, %v6884_v22 }
 0x617   : > { %6406 = vmatprep.subr.mxu0 %v6884_v22 }
 0x618   : > { %6407 = vmatpush3.msra.mxu0 %v7110_v18 }
 0x619   : > { %6408 = vmatprep.subr.mxu0 %v6884_v22 }
 0x61a   : > { %6409 = vmatpush3.msra.mxu0 %v7132_v21 }
 0x61b   : > { %6410 = vmatprep.subr.mxu0 %v6884_v22 }
 0x61c   : > { %6411 = vmatpush3.msra.mxu0 %v7152_v29 }
 0x61d   : > { %6426 = vmatprep.subr.mxu0 %v6884_v22 }
 0x6b9   : > { %v2311_v31 = vpop.f32.mrf.mxu1 }
 0x6bb   : > { %v6359_v35 = vpop.f32.mrf.mxu1 }
 0x6c1   : > { %v2468_v39 = vpop.f32.mrf.mxu1 }
 0x6c2   : > { %v2220_v38 = vpop.f32.mrf.mxu0 }
 0x6c3   : > { %v6381_v40 = vpop.f32.mrf.mxu1  ;;  %v2312_v47 = vadd.f32 %v2311_v31, %v2220_v38 }
 0x6c4   : > { %v6348_v44 = vpop.f32.mrf.mxu0 }
 0x6ca   : > { %v2391_v45 = vpop.f32.mrf.mxu0 }
 0x6cb   : > { %v2626_v46 = vpop.f32.mrf.mxu1  ;;  %v2392_v51 = vadd.f32 %v2391_v45, %v2312_v47 }
 0x6cc   : > { %v6370_v48 = vpop.f32.mrf.mxu0 }
 0x6cd   : > { %v6403_v50 = vpop.f32.mrf.mxu1  ;;  %v2469_v52 = vadd.f32 %v2468_v39, %v2392_v51 }
 0x6d3   : > { %v2551_v49 = vpop.f32.mrf.mxu0 }
 0x6d4   : > { %v2552_v54 = vadd.f32 %v2551_v49, %v2469_v52 }
 0x6d5   : > { %v6392_v55 = vpop.f32.mrf.mxu0 }
 0x6d6   : > { %v2627_v56 = vadd.f32 %v2626_v46, %v2552_v54 }
 0x6d8   : > { %v2630_v53 = vadd.f32 %v2627_v56, %v7304_v6 }
 0x6da   : > { %6836 = vtanh.f32 %v2630_v53 }
 0x6e7   : > { %v6837_v57 = vpop.eup %6836 }
 0x6e8   : > { %2636 = vrot.lane.b32.xlu0 %v6837_v57, %s6886_s10  ;;  %v2632_v62 = vmul.f32 0.5, %v6837_v57 }
 0x6ea   : > { %v2633_v63 = vadd.f32 0.5, %v2632_v62 }
 0x6ec   : > { %v2634_v1 = vmul.f32 %v2633_v63, %v7391_v5 }
 0x75a   : > { %v2637_v61 = vpop.permute.xlu0 %2636 }
 0x75b   : > { %v2639_v0 = vmul.f32 %v2637_v61, %v2633_v63 }
 0x75d   : > { %2641 = vrot.lane.b32.xlu1 %v2639_v0, %s6887_s11 }
 0x7cf   : > { %v2642_v34 = vpop.permute.xlu1 %2641 }
 0x7d0   : > { %v7461_v42 = vadd.f32 %v2642_v34, %v2634_v1 }
 0x7d2   : > { %6838 = vtanh.f32 %v7461_v42 }
 0x7df   : > { %v6839_v3 = vpop.eup %6838 }
 0x7e0   : > { %2647 = vrot.lane.b32.xlu0 %v6839_v3, %s6886_s10 }
 0x852   : > { %v2648_v6 = vpop.permute.xlu0 %2647 }
 0x853   : > { %v2650_v41 = vmul.f32 %v2648_v6, %v2633_v63 }
 0x855   : > { %2652 = vrot.lane.b32.xlu1 %v2650_v41, %s6887_s11 }
 0x8c7   : > { %v2653_v8 = vpop.permute.xlu1 %2652 }
 0x8c8   : > { %v2654_v4 = vsel %vm1119_vm2, %v2653_v8, 0 }
 0x8c9   : > { %v2725_v12 = vand.u32 4294901760, %v2654_v4 }
 0x8cb   : > { %v2726_v60 = vsub.f32 %v2654_v4, %v2725_v12  ;;  %6424 = vmatmul.mubr.f32.vlgmr.msra.gmra.mxu1 %v2725_v12 }
 0x8cc   : > { %6438 = vmatpush3.msra.mxu1 %v7095_v13  ;;  %6445 = vmatprep.mubr.msk.f32.mxu1 %vm6885_vm1, %v6884_v22 }
 0x8cd   : > { %v2727_v5 = vand.u32 4294901760, %v2726_v60  ;;  %6439 = vmatprep.subr.mxu1 %v6884_v22 }
 0x8ce   : > { %6440 = vmatpush3.msra.mxu1 %v7110_v18 }
 0x8cf   : > { %v2728_v7 = vsub.f32 %v2726_v60, %v2727_v5  ;;  %6441 = vmatprep.subr.mxu1 %v6884_v22 }
 0x8d0   : > { %6442 = vmatpush3.msra.mxu1 %v7132_v21 }
 0x8d1   : > { %v2729_v59 = vand.u32 4294901760, %v2728_v7  ;;  %6443 = vmatprep.subr.mxu1 %v6884_v22 }
 0x8d2   : > { %6444 = vmatpush3.msra.mxu1 %v7152_v29 }
 0x8d3   : > { %6446 = vmatmul.mubr.f32.vlgmr.msra.gmra.mxu1 %v2727_v5  ;;  %6459 = vmatprep.subr.mxu1 %v6884_v22 }
 0x8d4   : > { %6413 = vmatmul.mubr.f32.vlgmr.msra.gmra.mxu0 %v2729_v59  ;;  %6460 = vmatpush3.msra.mxu1 %v7095_v13 }
 0x8d5   : > { %6427 = vmatpush3.msra.mxu0 %v7106_v17  ;;  %6461 = vmatprep.subr.mxu1 %v6884_v22 }
 0x8d6   : > { %6428 = vmatprep.subr.mxu0 %v6884_v22  ;;  %6462 = vmatpush3.msra.mxu1 %v7110_v18 }
 0x8d7   : > { %6429 = vmatpush3.msra.mxu0 %v7130_v20  ;;  %6463 = vmatprep.subr.mxu1 %v6884_v22 }
 0x8d8   : > { %6430 = vmatprep.subr.mxu0 %v6884_v22  ;;  %6464 = vmatpush3.msra.mxu1 %v7132_v21 }
 0x8d9   : > { %6431 = vmatpush3.msra.mxu0 %v7150_v28  ;;  %6465 = vmatprep.subr.mxu1 %v6884_v22 }
 0x8da   : > { %6432 = vmatprep.subr.mxu0 %v6884_v22  ;;  %6434 = vmatprep.mubr.msk.f32.mxu0 %vm6885_vm1, %v6884_v22 }
 0x8db   : > { %6433 = vmatpush3.msra.mxu0 %v7165_v33  ;;  %6466 = vmatpush3.msra.mxu1 %v7152_v29 }
 0x8dc   : > { %6467 = vmatprep.mubr.msk.f32.mxu1 %vm6885_vm1, %v6884_v22  ;;  %6435 = vmatmul.mubr.f32.vlgmr.msra.gmra.mxu0 %v2726_v60 }
 0x8dd   : > { %6448 = vmatprep.subr.mxu0 %v6884_v22  ;;  %6468 = vmatmul.mubr.f32.vlgmr.msra.gmra.mxu1 %v2725_v12 }
 0x8de   : > { %6449 = vmatpush3.msra.mxu0 %v7125_v10  ;;  %6456 = vmatprep.mubr.msk.f32.mxu0 %vm6885_vm1, %v6884_v22 }
 0x8df   : > { %6450 = vmatprep.subr.mxu0 %v6884_v22  ;;  %6481 = vmatprep.subr.mxu1 %v6884_v22 }
 0x8e0   : > { %6451 = vmatpush3.msra.mxu0 %v7147_v11  ;;  %6482 = vmatpush3.msra.mxu1 %v7156_v30 }
 0x8e1   : > { %6452 = vmatprep.subr.mxu0 %v6884_v22  ;;  %6483 = vmatprep.subr.mxu1 %v6884_v22 }
 0x8e2   : > { %6453 = vmatpush3.msra.mxu0 %v7162_v32  ;;  %6484 = vmatpush3.msra.mxu1 %v7172_v25 }
 0x8e3   : > { %6454 = vmatprep.subr.mxu0 %v6884_v22  ;;  %6485 = vmatprep.subr.mxu1 %v6884_v22 }
 0x8e4   : > { %6455 = vmatpush3.msra.mxu0 %v7177_v36  ;;  %6486 = vmatpush3.msra.mxu1 %v7187_v26 }
 0x8e5   : > { %6457 = vmatmul.mubr.f32.vlgmr.msra.gmra.mxu0 %v2725_v12  ;;  %6487 = vmatprep.subr.mxu1 %v6884_v22 }
 0x8e6   : > { %6488 = vmatpush3.msra.mxu1 %v7199_v27  ;;  %6470 = vmatprep.subr.mxu0 %v6884_v22 }
 0x8e7   : > { %6489 = vmatprep.mubr.msk.f32.mxu1 %vm6885_vm1, %v6884_v22  ;;  %6503 = vmatprep.subr.mxu1 %v6884_v22 }
 0x8e8   : > { %6471 = vmatpush3.msra.mxu0 %v7095_v13  ;;  %6478 = vmatprep.mubr.msk.f32.mxu0 %vm6885_vm1, %v6884_v22 }
 0x8e9   : > { %6472 = vmatprep.subr.mxu0 %v6884_v22 }
 0x8ea   : > { %6473 = vmatpush3.msra.mxu0 %v7110_v18 }
 0x8eb   : > { %6474 = vmatprep.subr.mxu0 %v6884_v22 }
 0x8ec   : > { %6475 = vmatpush3.msra.mxu0 %v7132_v21 }
 0x8ed   : > { %6476 = vmatprep.subr.mxu0 %v6884_v22 }
 0x8ee   : > { %6477 = vmatpush3.msra.mxu0 %v7152_v29 }
 0x8ef   : > { %6492 = vmatprep.subr.mxu0 %v6884_v22 }
 0x98b   : > { %v2822_v58 = vpop.f32.mrf.mxu1 }
 0x98d   : > { %v6425_v15 = vpop.f32.mrf.mxu1 }
 0x993   : > { %v2979_v16 = vpop.f32.mrf.mxu1 }
 0x994   : > { %v2731_v14 = vpop.f32.mrf.mxu0 }
 0x995   : > { %v6447_v19 = vpop.f32.mrf.mxu1  ;;  %v2823_v39 = vadd.f32 %v2822_v58, %v2731_v14 }
 0x996   : > { %v6414_v23 = vpop.f32.mrf.mxu0 }
 0x99c   : > { %v2902_v31 = vpop.f32.mrf.mxu0 }
 0x99d   : > { %v3137_v35 = vpop.f32.mrf.mxu1  ;;  %v2903_v44 = vadd.f32 %v2902_v31, %v2823_v39 }
 0x99e   : > { %v6436_v38 = vpop.f32.mrf.mxu0 }
 0x99f   : > { %v6469_v40 = vpop.f32.mrf.mxu1  ;;  %v2980_v45 = vadd.f32 %v2979_v16, %v2903_v44 }
 0x9a5   : > { %v3062_v46 = vpop.f32.mrf.mxu0 }
 0x9a6   : > { %v3063_v47 = vadd.f32 %v3062_v46, %v2980_v45 }
 0x9a7   : > { %v6458_v48 = vpop.f32.mrf.mxu0 }
 0x9a8   : > { %v3138_v50 = vadd.f32 %v3137_v35, %v3063_v47 }
 0x9aa   : > { %v3141_v51 = vadd.f32 %v3138_v50, %v7302_v2 }
 0x9ac   : > { %6840 = vtanh.f32 %v3141_v51 }
 0x9b9   : > { %v6841_v52 = vpop.eup %6840 }
 0x9ba   : > { %3147 = vrot.lane.b32.xlu0 %v6841_v52, %s6886_s10  ;;  %v3143_v49 = vmul.f32 0.5, %v6841_v52 }
 0x9bc   : > { %v3144_v54 = vadd.f32 0.5, %v3143_v49 }
 0x9be   : > { %v3145_v53 = vmul.f32 %v3144_v54, %v7461_v42 }
 0xa2c   : > { %v3148_v55 = vpop.permute.xlu0 %3147 }
 0xa2d   : > { %v3150_v56 = vmul.f32 %v3148_v55, %v3144_v54 }
 0xa2f   : > { %3152 = vrot.lane.b32.xlu1 %v3150_v56, %s6887_s11 }
 0xaa1   : > { %v3153_v57 = vpop.permute.xlu1 %3152 }
 0xaa2   : > { %v7531_v62 = vadd.f32 %v3153_v57, %v3145_v53 }
 0xaa4   : > { %6842 = vtanh.f32 %v7531_v62 }
 0xab1   : > { %v6843_v63 = vpop.eup %6842 }
 0xab2   : > { %3158 = vrot.lane.b32.xlu0 %v6843_v63, %s6886_s10 }
 0xb24   : > { %v3159_v2 = vpop.permute.xlu0 %3158 }
 0xb25   : > { %v3161_v61 = vmul.f32 %v3159_v2, %v3144_v54 }
 0xb27   : > { %3163 = vrot.lane.b32.xlu1 %v3161_v61, %s6887_s11 }
 0xb99   : > { %v3164_v0 = vpop.permute.xlu1 %3163 }
 0xb9a   : > { %v3165_v1 = vsel %vm1119_vm2, %v3164_v0, 0 }
 0xb9b   : > { %v3236_v34 = vand.u32 4294901760, %v3165_v1 }
 0xb9d   : > { %v3237_v3 = vsub.f32 %v3165_v1, %v3236_v34  ;;  %6490 = vmatmul.mubr.f32.vlgmr.msra.gmra.mxu1 %v3236_v34 }
 0xb9e   : > { %6504 = vmatpush3.msra.mxu1 %v7095_v13  ;;  %6511 = vmatprep.mubr.msk.f32.mxu1 %vm6885_vm1, %v6884_v22 }
 0xb9f   : > { %v3238_v42 = vand.u32 4294901760, %v3237_v3  ;;  %6505 = vmatprep.subr.mxu1 %v6884_v22 }
 0xba0   : > { %6506 = vmatpush3.msra.mxu1 %v7110_v18 }
 0xba1   : > { %v3239_v6 = vsub.f32 %v3237_v3, %v3238_v42  ;;  %6507 = vmatprep.subr.mxu1 %v6884_v22 }
 0xba2   : > { %6508 = vmatpush3.msra.mxu1 %v7132_v21 }
 0xba3   : > { %v3240_v41 = vand.u32 4294901760, %v3239_v6  ;;  %6509 = vmatprep.subr.mxu1 %v6884_v22 }
 0xba4   : > { %6510 = vmatpush3.msra.mxu1 %v7152_v29 }
 0xba5   : > { %6512 = vmatmul.mubr.f32.vlgmr.msra.gmra.mxu1 %v3238_v42  ;;  %6525 = vmatprep.subr.mxu1 %v6884_v22 }
 0xba6   : > { %6479 = vmatmul.mubr.f32.vlgmr.msra.gmra.mxu0 %v3240_v41  ;;  %6526 = vmatpush3.msra.mxu1 %v7095_v13 }
 0xba7   : > { %6493 = vmatpush3.msra.mxu0 %v7106_v17  ;;  %6527 = vmatprep.subr.mxu1 %v6884_v22 }
 0xba8   : > { %6494 = vmatprep.subr.mxu0 %v6884_v22  ;;  %6528 = vmatpush3.msra.mxu1 %v7110_v18 }
 0xba9   : > { %6495 = vmatpush3.msra.mxu0 %v7130_v20  ;;  %6529 = vmatprep.subr.mxu1 %v6884_v22 }
 0xbaa   : > { %6496 = vmatprep.subr.mxu0 %v6884_v22  ;;  %6530 = vmatpush3.msra.mxu1 %v7132_v21 }
 0xbab   : > { %6497 = vmatpush3.msra.mxu0 %v7150_v28  ;;  %6531 = vmatprep.subr.mxu1 %v6884_v22 }
 0xbac   : > { %6498 = vmatprep.subr.mxu0 %v6884_v22  ;;  %6500 = vmatprep.mubr.msk.f32.mxu0 %vm6885_vm1, %v6884_v22 }
 0xbad   : > { %6499 = vmatpush3.msra.mxu0 %v7165_v33  ;;  %6532 = vmatpush3.msra.mxu1 %v7152_v29 }
 0xbae   : > { %6533 = vmatprep.mubr.msk.f32.mxu1 %vm6885_vm1, %v6884_v22  ;;  %6501 = vmatmul.mubr.f32.vlgmr.msra.gmra.mxu0 %v3237_v3 }
 0xbaf   : > { %6514 = vmatprep.subr.mxu0 %v6884_v22  ;;  %6534 = vmatmul.mubr.f32.vlgmr.msra.gmra.mxu1 %v3236_v34 }
 0xbb0   : > { %6515 = vmatpush3.msra.mxu0 %v7125_v10  ;;  %6522 = vmatprep.mubr.msk.f32.mxu0 %vm6885_vm1, %v6884_v22 }
 0xbb1   : > { %6516 = vmatprep.subr.mxu0 %v6884_v22  ;;  %6547 = vmatprep.subr.mxu1 %v6884_v22 }
 0xbb2   : > { %6517 = vmatpush3.msra.mxu0 %v7147_v11  ;;  %6548 = vmatpush3.msra.mxu1 %v7156_v30 }
 0xbb3   : > { %6518 = vmatprep.subr.mxu0 %v6884_v22  ;;  %6549 = vmatprep.subr.mxu1 %v6884_v22 }
 0xbb4   : > { %6519 = vmatpush3.msra.mxu0 %v7162_v32  ;;  %6550 = vmatpush3.msra.mxu1 %v7172_v25 }
 0xbb5   : > { %6520 = vmatprep.subr.mxu0 %v6884_v22  ;;  %6551 = vmatprep.subr.mxu1 %v6884_v22 }
 0xbb6   : > { %6521 = vmatpush3.msra.mxu0 %v7177_v36  ;;  %6552 = vmatpush3.msra.mxu1 %v7187_v26 }
 0xbb7   : > { %6523 = vmatmul.mubr.f32.vlgmr.msra.gmra.mxu0 %v3236_v34  ;;  %6553 = vmatprep.subr.mxu1 %v6884_v22 }
 0xbb8   : > { %6554 = vmatpush3.msra.mxu1 %v7199_v27  ;;  %6536 = vmatprep.subr.mxu0 %v6884_v22 }
 0xbb9   : > { %6555 = vmatprep.mubr.msk.f32.mxu1 %vm6885_vm1, %v6884_v22  ;;  %6569 = vmatprep.subr.mxu1 %v6884_v22 }
 0xbba   : > { %6537 = vmatpush3.msra.mxu0 %v7095_v13  ;;  %6544 = vmatprep.mubr.msk.f32.mxu0 %vm6885_vm1, %v6884_v22 }
 0xbbb   : > { %6538 = vmatprep.subr.mxu0 %v6884_v22 }
 0xbbc   : > { %6539 = vmatpush3.msra.mxu0 %v7110_v18 }
 0xbbd   : > { %6540 = vmatprep.subr.mxu0 %v6884_v22 }
 0xbbe   : > { %6541 = vmatpush3.msra.mxu0 %v7132_v21 }
 0xbbf   : > { %6542 = vmatprep.subr.mxu0 %v6884_v22 }
 0xbc0   : > { %6543 = vmatpush3.msra.mxu0 %v7152_v29 }
 0xbc1   : > { %6558 = vmatprep.subr.mxu0 %v6884_v22 }
 0xc5d   : > { %v3333_v8 = vpop.f32.mrf.mxu1 }
 0xc5f   : > { %v6491_v4 = vpop.f32.mrf.mxu1 }
 0xc65   : > { %v3490_v12 = vpop.f32.mrf.mxu1 }
 0xc66   : > { %v3242_v60 = vpop.f32.mrf.mxu0 }
 0xc67   : > { %v6513_v5 = vpop.f32.mrf.mxu1  ;;  %v3334_v15 = vadd.f32 %v3333_v8, %v3242_v60 }
 0xc68   : > { %v6480_v7 = vpop.f32.mrf.mxu0 }
 0xc6e   : > { %v3413_v59 = vpop.f32.mrf.mxu0 }
 0xc6f   : > { %v3648_v58 = vpop.f32.mrf.mxu1  ;;  %v3414_v19 = vadd.f32 %v3413_v59, %v3334_v15 }
 0xc70   : > { %v6502_v16 = vpop.f32.mrf.mxu0 }
 0xc71   : > { %v6535_v14 = vpop.f32.mrf.mxu1  ;;  %v3491_v23 = vadd.f32 %v3490_v12, %v3414_v19 }
 0xc77   : > { %v3573_v31 = vpop.f32.mrf.mxu0 }
 0xc78   : > { %v3574_v35 = vadd.f32 %v3573_v31, %v3491_v23 }
 0xc79   : > { %v6524_v39 = vpop.f32.mrf.mxu0 }
 0xc7a   : > { %v3649_v38 = vadd.f32 %v3648_v58, %v3574_v35 }
 0xc7c   : > { %v3652_v40 = vadd.f32 %v3649_v38, %v7308_v24 }
 0xc7e   : > { %6844 = vtanh.f32 %v3652_v40 }
 0xc8b   : > { %v6845_v44 = vpop.eup %6844 }
 0xc8c   : > { %3658 = vrot.lane.b32.xlu0 %v6845_v44, %s6886_s10  ;;  %v3654_v45 = vmul.f32 0.5, %v6845_v44 }
 0xc8e   : > { %v3655_v46 = vadd.f32 0.5, %v3654_v45 }
 0xc90   : > { %v3656_v50 = vmul.f32 %v3655_v46, %v7531_v62 }
 0xcfe   : > { %v3659_v47 = vpop.permute.xlu0 %3658 }
 0xcff   : > { %v3661_v48 = vmul.f32 %v3659_v47, %v3655_v46 }
 0xd01   : > { %3663 = vrot.lane.b32.xlu1 %v3661_v48, %s6887_s11 }
 0xd73   : > { %v3664_v51 = vpop.permute.xlu1 %3663 }
 0xd74   : > { %v7601_v52 = vadd.f32 %v3664_v51, %v3656_v50 }
 0xd76   : > { %6846 = vtanh.f32 %v7601_v52 }
 0xd83   : > { %v6847_v49 = vpop.eup %6846 }
 0xd84   : > { %3669 = vrot.lane.b32.xlu0 %v6847_v49, %s6886_s10 }
 0xdf6   : > { %v3670_v24 = vpop.permute.xlu0 %3669 }
 0xdf7   : > { %v3672_v54 = vmul.f32 %v3670_v24, %v3655_v46 }
 0xdf9   : > { %3674 = vrot.lane.b32.xlu1 %v3672_v54, %s6887_s11 }
 0xe6b   : > { %v3675_v55 = vpop.permute.xlu1 %3674 }
 0xe6c   : > { %v3676_v56 = vsel %vm1119_vm2, %v3675_v55, 0 }
 0xe6d   : > { %v3747_v53 = vand.u32 4294901760, %v3676_v56 }
 0xe6f   : > { %v3748_v57 = vsub.f32 %v3676_v56, %v3747_v53  ;;  %6556 = vmatmul.mubr.f32.vlgmr.msra.gmra.mxu1 %v3747_v53 }
 0xe70   : > { %6570 = vmatpush3.msra.mxu1 %v7095_v13  ;;  %6577 = vmatprep.mubr.msk.f32.mxu1 %vm6885_vm1, %v6884_v22 }
 0xe71   : > { %v3749_v62 = vand.u32 4294901760, %v3748_v57  ;;  %6571 = vmatprep.subr.mxu1 %v6884_v22 }
 0xe72   : > { %6572 = vmatpush3.msra.mxu1 %v7110_v18 }
 0xe73   : > { %v3750_v63 = vsub.f32 %v3748_v57, %v3749_v62  ;;  %6573 = vmatprep.subr.mxu1 %v6884_v22 }
 0xe74   : > { %6574 = vmatpush3.msra.mxu1 %v7132_v21 }
 0xe75   : > { %v3751_v2 = vand.u32 4294901760, %v3750_v63  ;;  %6575 = vmatprep.subr.mxu1 %v6884_v22 }
 0xe76   : > { %6576 = vmatpush3.msra.mxu1 %v7152_v29 }
 0xe77   : > { %6578 = vmatmul.mubr.f32.vlgmr.msra.gmra.mxu1 %v3749_v62  ;;  %6591 = vmatprep.subr.mxu1 %v6884_v22 }
 0xe78   : > { %6545 = vmatmul.mubr.f32.vlgmr.msra.gmra.mxu0 %v3751_v2  ;;  %6592 = vmatpush3.msra.mxu1 %v7095_v13 }
 0xe79   : > { %6559 = vmatpush3.msra.mxu0 %v7106_v17  ;;  %6593 = vmatprep.subr.mxu1 %v6884_v22 }
 0xe7a   : > { %6560 = vmatprep.subr.mxu0 %v6884_v22  ;;  %6594 = vmatpush3.msra.mxu1 %v7110_v18 }
 0xe7b   : > { %6561 = vmatpush3.msra.mxu0 %v7130_v20  ;;  %6595 = vmatprep.subr.mxu1 %v6884_v22 }
 0xe7c   : > { %6562 = vmatprep.subr.mxu0 %v6884_v22  ;;  %6596 = vmatpush3.msra.mxu1 %v7132_v21 }
 0xe7d   : > { %6563 = vmatpush3.msra.mxu0 %v7150_v28  ;;  %6597 = vmatprep.subr.mxu1 %v6884_v22 }
 0xe7e   : > { %6564 = vmatprep.subr.mxu0 %v6884_v22  ;;  %6566 = vmatprep.mubr.msk.f32.mxu0 %vm6885_vm1, %v6884_v22 }
 0xe7f   : > { %6565 = vmatpush3.msra.mxu0 %v7165_v33  ;;  %6598 = vmatpush3.msra.mxu1 %v7152_v29 }
 0xe80   : > { %6599 = vmatprep.mubr.msk.f32.mxu1 %vm6885_vm1, %v6884_v22  ;;  %6567 = vmatmul.mubr.f32.vlgmr.msra.gmra.mxu0 %v3748_v57 }
 0xe81   : > { %6580 = vmatprep.subr.mxu0 %v6884_v22  ;;  %6600 = vmatmul.mubr.f32.vlgmr.msra.gmra.mxu1 %v3747_v53 }
 0xe82   : > { %6581 = vmatpush3.msra.mxu0 %v7125_v10  ;;  %6588 = vmatprep.mubr.msk.f32.mxu0 %vm6885_vm1, %v6884_v22 }
 0xe83   : > { %6582 = vmatprep.subr.mxu0 %v6884_v22  ;;  %6613 = vmatprep.subr.mxu1 %v6884_v22 }
 0xe84   : > { %6583 = vmatpush3.msra.mxu0 %v7147_v11  ;;  %6614 = vmatpush3.msra.mxu1 %v7156_v30 }
 0xe85   : > { %6584 = vmatprep.subr.mxu0 %v6884_v22  ;;  %6615 = vmatprep.subr.mxu1 %v6884_v22 }
 0xe86   : > { %6585 = vmatpush3.msra.mxu0 %v7162_v32  ;;  %6616 = vmatpush3.msra.mxu1 %v7172_v25 }
 0xe87   : > { %6586 = vmatprep.subr.mxu0 %v6884_v22  ;;  %6617 = vmatprep.subr.mxu1 %v6884_v22 }
 0xe88   : > { %6587 = vmatpush3.msra.mxu0 %v7177_v36  ;;  %6618 = vmatpush3.msra.mxu1 %v7187_v26 }
 0xe89   : > { %6589 = vmatmul.mubr.f32.vlgmr.msra.gmra.mxu0 %v3747_v53  ;;  %6619 = vmatprep.subr.mxu1 %v6884_v22 }
 0xe8a   : > { %6620 = vmatpush3.msra.mxu1 %v7199_v27  ;;  %6602 = vmatprep.subr.mxu0 %v6884_v22 }
 0xe8b   : > { %6621 = vmatprep.mubr.msk.f32.mxu1 %vm6885_vm1, %v6884_v22  ;;  %6635 = vmatprep.subr.mxu1 %v6884_v22 }
 0xe8c   : > { %6603 = vmatpush3.msra.mxu0 %v7095_v13  ;;  %6610 = vmatprep.mubr.msk.f32.mxu0 %vm6885_vm1, %v6884_v22 }
 0xe8d   : > { %6604 = vmatprep.subr.mxu0 %v6884_v22 }
 0xe8e   : > { %6605 = vmatpush3.msra.mxu0 %v7110_v18 }
 0xe8f   : > { %6606 = vmatprep.subr.mxu0 %v6884_v22 }
 0xe90   : > { %6607 = vmatpush3.msra.mxu0 %v7132_v21 }
 0xe91   : > { %6608 = vmatprep.subr.mxu0 %v6884_v22 }
 0xe92   : > { %6609 = vmatpush3.msra.mxu0 %v7152_v29 }
 0xe93   : > { %6624 = vmatprep.subr.mxu0 %v6884_v22 }
 0xf2f   : > { %v3844_v61 = vpop.f32.mrf.mxu1 }
 0xf31   : > { %v6557_v0 = vpop.f32.mrf.mxu1 }
 0xf37   : > { %v4001_v1 = vpop.f32.mrf.mxu1 }
 0xf38   : > { %v3753_v34 = vpop.f32.mrf.mxu0 }
 0xf39   : > { %v6579_v3 = vpop.f32.mrf.mxu1  ;;  %v3845_v8 = vadd.f32 %v3844_v61, %v3753_v34 }
 0xf3a   : > { %v6546_v42 = vpop.f32.mrf.mxu0 }
 0xf40   : > { %v3924_v6 = vpop.f32.mrf.mxu0 }
 0xf41   : > { %v4159_v41 = vpop.f32.mrf.mxu1  ;;  %v3925_v60 = vadd.f32 %v3924_v6, %v3845_v8 }
 0xf42   : > { %v6568_v4 = vpop.f32.mrf.mxu0 }
 0xf43   : > { %v6601_v12 = vpop.f32.mrf.mxu1  ;;  %v4002_v5 = vadd.f32 %v4001_v1, %v3925_v60 }
 0xf49   : > { %v4084_v7 = vpop.f32.mrf.mxu0 }
 0xf4a   : > { %v4085_v59 = vadd.f32 %v4084_v7, %v4002_v5 }
 0xf4b   : > { %v6590_v58 = vpop.f32.mrf.mxu0 }
 0xf4c   : > { %v4160_v15 = vadd.f32 %v4159_v41, %v4085_v59 }
 0xf4e   : > { %v4163_v16 = vadd.f32 %v4160_v15, %v7306_v9 }
 0xf50   : > { %6848 = vtanh.f32 %v4163_v16 }
 0xf5d   : > { %v6849_v14 = vpop.eup %6848 }
 0xf5e   : > { %4169 = vrot.lane.b32.xlu0 %v6849_v14, %s6886_s10  ;;  %v4165_v19 = vmul.f32 0.5, %v6849_v14 }
 0xf60   : > { %v4166_v23 = vadd.f32 0.5, %v4165_v19 }
 0xf62   : > { %v4167_v39 = vmul.f32 %v4166_v23, %v7601_v52 }
 0xfd0   : > { %v4170_v31 = vpop.permute.xlu0 %4169 }
 0xfd1   : > { %v4172_v35 = vmul.f32 %v4170_v31, %v4166_v23 }
 0xfd3   : > { %4174 = vrot.lane.b32.xlu1 %v4172_v35, %s6887_s11 }
0x1045   : > { %v4175_v38 = vpop.permute.xlu1 %4174 }
0x1046   : > { %v7671_v40 = vadd.f32 %v4175_v38, %v4167_v39 }
0x1048   : > { %6850 = vtanh.f32 %v7671_v40 }
0x1055   : > { %v6851_v44 = vpop.eup %6850 }
0x1056   : > { %4180 = vrot.lane.b32.xlu0 %v6851_v44, %s6886_s10 }
0x10c8   : > { %v4181_v9 = vpop.permute.xlu0 %4180 }
0x10c9   : > { %v4183_v45 = vmul.f32 %v4181_v9, %v4166_v23 }
0x10cb   : > { %4185 = vrot.lane.b32.xlu1 %v4183_v45, %s6887_s11 }
0x113d   : > { %v4186_v46 = vpop.permute.xlu1 %4185 }
0x113e   : > { %v4187_v47 = vsel %vm1119_vm2, %v4186_v46, 0 }
0x113f   : > { %v4258_v48 = vand.u32 4294901760, %v4187_v47 }
0x1141   : > { %v4259_v50 = vsub.f32 %v4187_v47, %v4258_v48  ;;  %6622 = vmatmul.mubr.f32.vlgmr.msra.gmra.mxu1 %v4258_v48 }
0x1142   : > { %6636 = vmatpush3.msra.mxu1 %v7095_v13  ;;  %6643 = vmatprep.mubr.msk.f32.mxu1 %vm6885_vm1, %v6884_v22 }
0x1143   : > { %v4260_v51 = vand.u32 4294901760, %v4259_v50  ;;  %6637 = vmatprep.subr.mxu1 %v6884_v22 }
0x1144   : > { %6638 = vmatpush3.msra.mxu1 %v7110_v18 }
0x1145   : > { %v4261_v52 = vsub.f32 %v4259_v50, %v4260_v51  ;;  %6639 = vmatprep.subr.mxu1 %v6884_v22 }
0x1146   : > { %6640 = vmatpush3.msra.mxu1 %v7132_v21 }
0x1147   : > { %v4262_v49 = vand.u32 4294901760, %v4261_v52  ;;  %6641 = vmatprep.subr.mxu1 %v6884_v22 }
0x1148   : > { %6642 = vmatpush3.msra.mxu1 %v7152_v29 }
0x1149   : > { %6644 = vmatmul.mubr.f32.vlgmr.msra.gmra.mxu1 %v4260_v51  ;;  %6657 = vmatprep.subr.mxu1 %v6884_v22 }
0x114a   : > { %6611 = vmatmul.mubr.f32.vlgmr.msra.gmra.mxu0 %v4262_v49  ;;  %6658 = vmatpush3.msra.mxu1 %v7095_v13 }
0x114b   : > { %6625 = vmatpush3.msra.mxu0 %v7106_v17  ;;  %6659 = vmatprep.subr.mxu1 %v6884_v22 }
0x114c   : > { %6626 = vmatprep.subr.mxu0 %v6884_v22  ;;  %6660 = vmatpush3.msra.mxu1 %v7110_v18 }
0x114d   : > { %6627 = vmatpush3.msra.mxu0 %v7130_v20  ;;  %6661 = vmatprep.subr.mxu1 %v6884_v22 }
0x114e   : > { %6628 = vmatprep.subr.mxu0 %v6884_v22  ;;  %6662 = vmatpush3.msra.mxu1 %v7132_v21 }
0x114f   : > { %6629 = vmatpush3.msra.mxu0 %v7150_v28  ;;  %6663 = vmatprep.subr.mxu1 %v6884_v22 }
0x1150   : > { %6630 = vmatprep.subr.mxu0 %v6884_v22  ;;  %6632 = vmatprep.mubr.msk.f32.mxu0 %vm6885_vm1, %v6884_v22 }
0x1151   : > { %6631 = vmatpush3.msra.mxu0 %v7165_v33  ;;  %6664 = vmatpush3.msra.mxu1 %v7152_v29 }
0x1152   : > { %6665 = vmatprep.mubr.msk.f32.mxu1 %vm6885_vm1, %v6884_v22  ;;  %6633 = vmatmul.mubr.f32.vlgmr.msra.gmra.mxu0 %v4259_v50 }
0x1153   : > { %6646 = vmatprep.subr.mxu0 %v6884_v22  ;;  %6666 = vmatmul.mubr.f32.vlgmr.msra.gmra.mxu1 %v4258_v48 }
0x1154   : > { %6647 = vmatpush3.msra.mxu0 %v7125_v10  ;;  %6654 = vmatprep.mubr.msk.f32.mxu0 %vm6885_vm1, %v6884_v22 }
0x1155   : > { %6648 = vmatprep.subr.mxu0 %v6884_v22  ;;  %6679 = vmatprep.subr.mxu1 %v6884_v22 }
0x1156   : > { %6649 = vmatpush3.msra.mxu0 %v7147_v11  ;;  %6680 = vmatpush3.msra.mxu1 %v7156_v30 }
0x1157   : > { %6650 = vmatprep.subr.mxu0 %v6884_v22  ;;  %6681 = vmatprep.subr.mxu1 %v6884_v22 }
0x1158   : > { %6651 = vmatpush3.msra.mxu0 %v7162_v32  ;;  %6682 = vmatpush3.msra.mxu1 %v7172_v25 }
0x1159   : > { %6652 = vmatprep.subr.mxu0 %v6884_v22  ;;  %6683 = vmatprep.subr.mxu1 %v6884_v22 }
0x115a   : > { %6653 = vmatpush3.msra.mxu0 %v7177_v36  ;;  %6684 = vmatpush3.msra.mxu1 %v7187_v26 }
0x115b   : > { %6655 = vmatmul.mubr.f32.vlgmr.msra.gmra.mxu0 %v4258_v48  ;;  %6685 = vmatprep.subr.mxu1 %v6884_v22 }
0x115c   : > { %6686 = vmatpush3.msra.mxu1 %v7199_v27  ;;  %6668 = vmatprep.subr.mxu0 %v6884_v22 }
0x115d   : > { %6687 = vmatprep.mubr.msk.f32.mxu1 %vm6885_vm1, %v6884_v22  ;;  %6701 = vmatprep.subr.mxu1 %v6884_v22 }
0x115e   : > { %6669 = vmatpush3.msra.mxu0 %v7095_v13  ;;  %6676 = vmatprep.mubr.msk.f32.mxu0 %vm6885_vm1, %v6884_v22 }
0x115f   : > { %6670 = vmatprep.subr.mxu0 %v6884_v22 }
0x1160   : > { %6671 = vmatpush3.msra.mxu0 %v7110_v18 }
0x1161   : > { %6672 = vmatprep.subr.mxu0 %v6884_v22 }
0x1162   : > { %6673 = vmatpush3.msra.mxu0 %v7132_v21 }
0x1163   : > { %6674 = vmatprep.subr.mxu0 %v6884_v22 }
0x1164   : > { %6675 = vmatpush3.msra.mxu0 %v7152_v29 }
0x1165   : > { %6690 = vmatprep.subr.mxu0 %v6884_v22 }
0x1201   : > { %v4355_v30 = vpop.f32.mrf.mxu1 }
0x1203   : > { %v6623_v25 = vpop.f32.mrf.mxu1 }
0x1204   : > { %v5207_v25 = vld [vmem:[%s7903_s4 + $0x8] sm:$0xff] }
0x1209   : > { %v4512_v26 = vpop.f32.mrf.mxu1 }
0x120a   : > { %v4264_v27 = vpop.f32.mrf.mxu0 }
0x120b   : > { %v6645_v24 = vpop.f32.mrf.mxu1  ;;  %v4356_v53 = vadd.f32 %v4355_v30, %v4264_v27  ;;  %v5209_v30 = vld [vmem:[%s7903_s4 + $0x18] sm:$0xff] }
0x120c   : > { %v6612_v54 = vpop.f32.mrf.mxu0  ;;  %v7806_v24 = vand.u32 4294901760, %v5207_v25 }
0x1212   : > { %v4435_v55 = vpop.f32.mrf.mxu0 }
0x1213   : > { %v4670_v56 = vpop.f32.mrf.mxu1  ;;  %v4436_v63 = vadd.f32 %v4435_v55, %v4356_v53 }
0x1214   : > { %v6634_v57 = vpop.f32.mrf.mxu0 }
0x1215   : > { %v6667_v62 = vpop.f32.mrf.mxu1  ;;  %v4513_v2 = vadd.f32 %v4512_v26, %v4436_v63  ;;  %v5247_v26 = vand.u32 4294901760, %v5209_v30 }
0x1217   : > { %v7808_v54 = vsub.f32 %v5209_v30, %v5247_v26 }
0x1219   : > { %v5328_v53 = vand.u32 4294901760, %v7808_v54 }
0x121b   : > { %v4595_v61 = vpop.f32.mrf.mxu0  ;;  %v5329_v63 = vsub.f32 %v7808_v54, %v5328_v53 }
0x121c   : > { %v4596_v0 = vadd.f32 %v4595_v61, %v4513_v2 }
0x121d   : > { %v6656_v1 = vpop.f32.mrf.mxu0 }
0x121e   : > { %v4671_v34 = vadd.f32 %v4670_v56, %v4596_v0  ;;  %v7814_v56 = vsub.f32 %v5207_v25, %v7806_v24  ;;  %v5330_v0 = vand.u32 4294901760, %v5329_v63 }
0x1220   : > { %v4674_v3 = vadd.f32 %v4671_v34, %v7312_v43  ;;  %v5342_v62 = vand.u32 4294901760, %v7814_v56 }
0x1222   : > { %6852 = vtanh.f32 %v4674_v3  ;;  %v5343_v61 = vsub.f32 %v7814_v56, %v5342_v62 }
0x1224   : > { %v5344_v3 = vand.u32 4294901760, %v5343_v61 }
0x122f   : > { %v6853_v42 = vpop.eup %6852 }
0x1230   : > { %4680 = vrot.lane.b32.xlu0 %v6853_v42, %s6886_s10  ;;  %v4676_v6 = vmul.f32 0.5, %v6853_v42  ;;  %v5206_v42 = vld [vmem:[%s7903_s4] sm:$0xff] }
0x1232   : > { %v4677_v41 = vadd.f32 0.5, %v4676_v6  ;;  %v5256_v6 = vand.u32 4294901760, %v5206_v42 }
0x1234   : > { %v4678_v12 = vmul.f32 %v4677_v41, %v7671_v40 }
0x12a2   : > { %v4681_v8 = vpop.permute.xlu0 %4680 }
0x12a3   : > { %v4683_v4 = vmul.f32 %v4681_v8, %v4677_v41 }
0x12a5   : > { %4685 = vrot.lane.b32.xlu1 %v4683_v4, %s6887_s11 }
0x1317   : > { %v4686_v60 = vpop.permute.xlu1 %4685 }
0x1318   : > { %v7741_v5 = vadd.f32 %v4686_v60, %v4678_v12 }
0x131a   : > { %6854 = vtanh.f32 %v7741_v5 }
0x1327   : > { %v6855_v7 = vpop.eup %6854 }
0x1328   : > { %4691 = vrot.lane.b32.xlu0 %v6855_v7, %s6886_s10 }
0x139a   : > { %v4692_v43 = vpop.permute.xlu0 %4691 }
0x139b   : > { %v4694_v59 = vmul.f32 %v4692_v43, %v4677_v41  ;;  %v5348_v41 = vsub.f32 %v5206_v42, %v5256_v6 }
0x139d   : > { %4696 = vrot.lane.b32.xlu1 %v4694_v59, %s6887_s11  ;;  %v5349_v8 = vand.u32 4294901760, %v5348_v41 }
0x139f   : > { %v5350_v4 = vsub.f32 %v5348_v41, %v5349_v8 }
0x13a1   : > { %v5351_v12 = vand.u32 4294901760, %v5350_v4 }
0x140f   : > { %v4697_v58 = vpop.permute.xlu1 %4696 }
0x1410   : > { %v4698_v15 = vsel %vm1119_vm2, %v4697_v58, 0 }
0x1411   : > { %v4769_v16 = vand.u32 4294901760, %v4698_v15 }
0x1413   : > { %v4770_v14 = vsub.f32 %v4698_v15, %v4769_v16  ;;  %6688 = vmatmul.mubr.f32.vlgmr.msra.gmra.mxu1 %v4769_v16 }
0x1414   : > { %6702 = vmatpush3.msra.mxu1 %v7095_v13  ;;  %6709 = vmatprep.mubr.msk.f32.mxu1 %vm6885_vm1, %v6884_v22 }
0x1415   : > { %v4771_v19 = vand.u32 4294901760, %v4770_v14  ;;  %6703 = vmatprep.subr.mxu1 %v6884_v22 }
0x1416   : > { %6704 = vmatpush3.msra.mxu1 %v7110_v18 }
0x1417   : > { %v4772_v23 = vsub.f32 %v4770_v14, %v4771_v19  ;;  %6705 = vmatprep.subr.mxu1 %v6884_v22 }
0x1418   : > { %6706 = vmatpush3.msra.mxu1 %v7132_v21 }
0x1419   : > { %v4773_v31 = vand.u32 4294901760, %v4772_v23  ;;  %6707 = vmatprep.subr.mxu1 %v6884_v22 }
0x141a   : > { %6708 = vmatpush3.msra.mxu1 %v7152_v29 }
0x141b   : > { %6710 = vmatmul.mubr.f32.vlgmr.msra.gmra.mxu1 %v4771_v19  ;;  %6723 = vmatprep.subr.mxu1 %v6884_v22 }
0x141c   : > { %6677 = vmatmul.mubr.f32.vlgmr.msra.gmra.mxu0 %v4773_v31  ;;  %6724 = vmatpush3.msra.mxu1 %v7095_v13 }
0x141d   : > { %6691 = vmatpush3.msra.mxu0 %v7106_v17  ;;  %6725 = vmatprep.subr.mxu1 %v6884_v22 }
0x141e   : > { %6692 = vmatprep.subr.mxu0 %v6884_v22  ;;  %6726 = vmatpush3.msra.mxu1 %v7110_v18 }
0x141f   : > { %6693 = vmatpush3.msra.mxu0 %v7130_v20  ;;  %6727 = vmatprep.subr.mxu1 %v6884_v22 }
0x1420   : > { %6694 = vmatprep.subr.mxu0 %v6884_v22  ;;  %6728 = vmatpush3.msra.mxu1 %v7132_v21 }
0x1421   : > { %6695 = vmatpush3.msra.mxu0 %v7150_v28  ;;  %6729 = vmatprep.subr.mxu1 %v6884_v22 }
0x1422   : > { %6696 = vmatprep.subr.mxu0 %v6884_v22  ;;  %6698 = vmatprep.mubr.msk.f32.mxu0 %vm6885_vm1, %v6884_v22 }
0x1423   : > { %6697 = vmatpush3.msra.mxu0 %v7165_v33  ;;  %6730 = vmatpush3.msra.mxu1 %v7152_v29 }
0x1424   : > { %6731 = vmatprep.mubr.msk.f32.mxu1 %vm6885_vm1, %v6884_v22  ;;  %6699 = vmatmul.mubr.f32.vlgmr.msra.gmra.mxu0 %v4770_v14 }
0x1425   : > { %6712 = vmatprep.subr.mxu0 %v6884_v22  ;;  %6732 = vmatmul.mubr.f32.vlgmr.msra.gmra.mxu1 %v4769_v16 }
0x1426   : > { %6713 = vmatpush3.msra.mxu0 %v7125_v10  ;;  %6720 = vmatprep.mubr.msk.f32.mxu0 %vm6885_vm1, %v6884_v22 }
0x1427   : > { %6714 = vmatprep.subr.mxu0 %v6884_v22  ;;  %6745 = vmatprep.subr.mxu1 %v6884_v22 }
0x1428   : > { %6715 = vmatpush3.msra.mxu0 %v7147_v11  ;;  %6753 = vmatprep.mubr.msk.f32.mxu1 %vm6885_vm1, %v6884_v22 }
0x1429   : > { %6716 = vmatprep.subr.mxu0 %v6884_v22  ;;  %6746 = vmatpush3.msra.mxu1 %v5330_v0 }
0x142a   : > { %6717 = vmatpush3.msra.mxu0 %v7162_v32  ;;  %6747 = vmatprep.subr.mxu1 %v6884_v22 }
0x142b   : > { %6718 = vmatprep.subr.mxu0 %v6884_v22 }
0x142c   : > { %6719 = vmatpush3.msra.mxu0 %v7177_v36 }
0x142d   : > { %6721 = vmatmul.mubr.f32.vlgmr.msra.gmra.mxu0 %v4769_v16  ;;  %6734 = vmatprep.subr.mxu0 %v6884_v22 }
0x142e   : > { %6742 = vmatprep.mubr.msk.f32.mxu0 %vm6885_vm1, %v6884_v22  ;;  %6735 = vmatpush3.msra.mxu0 %v5247_v26 }
0x142f   : > { %6736 = vmatprep.subr.mxu0 %v6884_v22 }
0x14d3   : > { %v4866_v13 = vpop.f32.mrf.mxu1 }
0x14d5   : > { %v6689_v17 = vpop.f32.mrf.mxu1 }
0x14db   : > { %v5023_v18 = vpop.f32.mrf.mxu1 }
0x14dc   : > { %v4775_v10 = vpop.f32.mrf.mxu0 }
0x14dd   : > { %v6711_v20 = vpop.f32.mrf.mxu1  ;;  %v4867_v29 = vadd.f32 %v4866_v13, %v4775_v10  ;;  %v5777_v10 = vld [vmem:[%s7904_s5] ss:$0 sm:$0xff] }
0x14de   : > { %v6678_v21 = vpop.f32.mrf.mxu0 }
0x14e4   : > { %v4946_v11 = vpop.f32.mrf.mxu0 }
0x14e5   : > { %v5181_v28 = vpop.f32.mrf.mxu1  ;;  %v4947_v35 = vadd.f32 %v4946_v11, %v4867_v29 }
0x14e6   : > { %v6700_v32 = vpop.f32.mrf.mxu0 }
0x14e7   : > { %v6733_v33 = vpop.f32.mrf.mxu1  ;;  %v5024_v39 = vadd.f32 %v5023_v18, %v4947_v35 }
0x14ed   : > { %v5106_v36 = vpop.f32.mrf.mxu0 }
0x14ee   : > { %v5107_v38 = vadd.f32 %v5106_v36, %v5024_v39 }
0x14ef   : > { %v6722_v40 = vpop.f32.mrf.mxu0 }
0x14f0   : > { %v5182_v44 = vadd.f32 %v5181_v28, %v5107_v38 }
0x14f2   : > { %v5185_v9 = vadd.f32 %v5182_v44, %v7310_v37  ;;  %v5208_v37 = vld [vmem:[%s7903_s4 + $0x10] sm:$0xff] }
0x14f3   : > { %v7804_v27 = vand.u32 4294901760, %v5208_v37 }
0x14f4   : > { %6856 = vtanh.f32 %v5185_v9 }
0x14f5   : > { %v7811_v55 = vsub.f32 %v5208_v37, %v7804_v27  ;;  %6737 = vmatpush3.msra.mxu0 %v7804_v27 }
0x14f6   : > { %6738 = vmatprep.subr.mxu0 %v6884_v22 }
0x14f7   : > { %v5335_v57 = vand.u32 4294901760, %v7811_v55  ;;  %6739 = vmatpush3.msra.mxu0 %v7806_v24 }
0x14f8   : > { %6740 = vmatprep.subr.mxu0 %v6884_v22 }
0x14f9   : > { %v5336_v2 = vsub.f32 %v7811_v55, %v5335_v57  ;;  %6741 = vmatpush3.msra.mxu0 %v5256_v6 }
0x14fa   : > { %6756 = vmatprep.subr.mxu0 %v6884_v22 }
0x14fb   : > { %v5337_v1 = vand.u32 4294901760, %v5336_v2 }
0x14fd   : > { %6748 = vmatpush3.msra.mxu1 %v5337_v1 }
0x14fe   : > { %6749 = vmatprep.subr.mxu1 %v6884_v22 }
0x14ff   : > { %6750 = vmatpush3.msra.mxu1 %v5344_v3 }
0x1500   : > { %6751 = vmatprep.subr.mxu1 %v6884_v22 }
0x1501   : > { %v6857_v45 = vpop.eup %6856  ;;  %6752 = vmatpush3.msra.mxu1 %v5351_v12 }
0x1502   : > { %5191 = vrot.lane.b32.xlu0 %v6857_v45, %s6886_s10  ;;  %v5187_v46 = vmul.f32 0.5, %v6857_v45  ;;  %6767 = vmatprep.subr.mxu1 %v6884_v22 }
0x1504   : > { %v5188_v47 = vadd.f32 0.5, %v5187_v46 }
0x1506   : > { %v5189_v51 = vmul.f32 %v5188_v47, %v7741_v5 }
0x1574   : > { %v5192_v48 = vpop.permute.xlu0 %5191 }
0x1575   : > { %v5194_v50 = vmul.f32 %v5192_v48, %v5188_v47 }
0x1577   : > { %5196 = vrot.lane.b32.xlu1 %v5194_v50, %s6887_s11 }
0x15e9   : > { %v5197_v52 = vpop.permute.xlu1 %5196 }
0x15ea   : > { %v5199_v49 = vadd.f32 %v5197_v52, %v5189_v51 }
0x15ec   : > { %6858 = vtanh.f32 %v5199_v49 }
0x15f9   : > { %v6859_v34 = vpop.eup %6858 }
0x15fa   : > { %5202 = vrot.lane.b32.xlu0 %v6859_v34, %s6886_s10 }
0x166c   : > { %v5203_v60 = vpop.permute.xlu0 %5202 }
0x166d   : > { %v5205_v5 = vmul.f32 %v5203_v60, %v5188_v47 }
0x166f   : > { %5218 = vrot.lane.b32.xlu1 %v5205_v5, %s6887_s11 }
0x16e1   : > { %v5219_v7 = vpop.permute.xlu1 %5218 }
0x16e2   : > { %v5220_v43 = vsel %vm1119_vm2, %v5219_v7, 0 }
0x16e3   : > { %v5291_v59 = vand.u32 4294901760, %v5220_v43 }
0x16e5   : > { %v5292_v58 = vsub.f32 %v5220_v43, %v5291_v59  ;;  %6754 = vmatmul.mubr.f32.vlgmr.msra.gmra.mxu1 %v5291_v59 }
0x16e6   : > { %6768 = vmatpush3.msra.mxu1 %v5247_v26  ;;  %6775 = vmatprep.mubr.msk.f32.mxu1 %vm6885_vm1, %v6884_v22 }
0x16e7   : > { %v5293_v15 = vand.u32 4294901760, %v5292_v58  ;;  %6769 = vmatprep.subr.mxu1 %v6884_v22 }
0x16e8   : > { %6770 = vmatpush3.msra.mxu1 %v7804_v27 }
0x16e9   : > { %v5294_v16 = vsub.f32 %v5292_v58, %v5293_v15  ;;  %6771 = vmatprep.subr.mxu1 %v6884_v22 }
0x16ea   : > { %6772 = vmatpush3.msra.mxu1 %v7806_v24 }
0x16eb   : > { %v5295_v14 = vand.u32 4294901760, %v5294_v16  ;;  %6773 = vmatprep.subr.mxu1 %v6884_v22 }
0x16ec   : > { %6774 = vmatpush3.msra.mxu1 %v5256_v6 }
0x16ed   : > { %6776 = vmatmul.mubr.f32.vlgmr.msra.gmra.mxu1 %v5293_v15  ;;  %6789 = vmatprep.subr.mxu1 %v6884_v22 }
0x16ee   : > { %6743 = vmatmul.mubr.f32.vlgmr.msra.gmra.mxu0 %v5295_v14  ;;  %6790 = vmatpush3.msra.mxu1 %v5247_v26 }
0x16ef   : > { %6757 = vmatpush3.msra.mxu0 %v7808_v54  ;;  %6791 = vmatprep.subr.mxu1 %v6884_v22 }
0x16f0   : > { %6758 = vmatprep.subr.mxu0 %v6884_v22  ;;  %6792 = vmatpush3.msra.mxu1 %v7804_v27 }
0x16f1   : > { %6759 = vmatpush3.msra.mxu0 %v7811_v55  ;;  %6793 = vmatprep.subr.mxu1 %v6884_v22 }
0x16f2   : > { %6760 = vmatprep.subr.mxu0 %v6884_v22  ;;  %6794 = vmatpush3.msra.mxu1 %v7806_v24 }
0x16f3   : > { %6761 = vmatpush3.msra.mxu0 %v7814_v56  ;;  %6795 = vmatprep.subr.mxu1 %v6884_v22 }
0x16f4   : > { %6762 = vmatprep.subr.mxu0 %v6884_v22  ;;  %6764 = vmatprep.mubr.msk.f32.mxu0 %vm6885_vm1, %v6884_v22 }
0x16f5   : > { %6763 = vmatpush3.msra.mxu0 %v5348_v41  ;;  %6796 = vmatpush3.msra.mxu1 %v5256_v6 }
0x16f6   : > { %6797 = vmatprep.mubr.msk.f32.mxu1 %vm6885_vm1, %v6884_v22  ;;  %6765 = vmatmul.mubr.f32.vlgmr.msra.gmra.mxu0 %v5292_v58 }
0x16f7   : > { %6778 = vmatprep.subr.mxu0 %v6884_v22  ;;  %6798 = vmatmul.mubr.f32.vlgmr.msra.gmra.mxu1 %v5291_v59 }
0x16f8   : > { %6779 = vmatpush3.msra.mxu0 %v5328_v53  ;;  %6786 = vmatprep.mubr.msk.f32.mxu0 %vm6885_vm1, %v6884_v22 }
0x16f9   : > { %6780 = vmatprep.subr.mxu0 %v6884_v22 }
0x16fa   : > { %6781 = vmatpush3.msra.mxu0 %v5335_v57 }
0x16fb   : > { %6782 = vmatprep.subr.mxu0 %v6884_v22 }
0x16fc   : > { %6783 = vmatpush3.msra.mxu0 %v5342_v62 }
0x16fd   : > { %6784 = vmatprep.subr.mxu0 %v6884_v22 }
0x16fe   : > { %6785 = vmatpush3.msra.mxu0 %v5349_v8 }
0x16ff   : > { %6787 = vmatmul.mubr.f32.vlgmr.msra.gmra.mxu0 %v5291_v59 }
0x17a5   : > { %v5388_v19 = vpop.f32.mrf.mxu1 }
0x17a7   : > { %v6755_v23 = vpop.f32.mrf.mxu1 }
0x17ad   : > { %v5545_v31 = vpop.f32.mrf.mxu1 }
0x17ae   : > { %v5297_v13 = vpop.f32.mrf.mxu0 }
0x17af   : > { %v6777_v17 = vpop.f32.mrf.mxu1  ;;  %v5298_v20 = vadd.f32 %v5777_v10, %v5297_v13 }
0x17b0   : > { %v6744_v18 = vpop.f32.mrf.mxu0 }
0x17b1   : > { %v5389_v28 = vadd.f32 %v5388_v19, %v5298_v20 }
0x17b6   : > { %v5468_v21 = vpop.f32.mrf.mxu0 }
0x17b7   : > { %v5703_v11 = vpop.f32.mrf.mxu1  ;;  %v5469_v32 = vadd.f32 %v5468_v21, %v5389_v28 }
0x17b8   : > { %v6766_v22 = vpop.f32.mrf.mxu0 }
0x17b9   : > { %v6799_v29 = vpop.f32.mrf.mxu1  ;;  %v5546_v33 = vadd.f32 %v5545_v31, %v5469_v32 }
0x17bf   : > { %v5628_v35 = vpop.f32.mrf.mxu0 }
0x17c0   : > { %v5629_v39 = vadd.f32 %v5628_v35, %v5546_v33 }
0x17c1   : > { %v6788_v36 = vpop.f32.mrf.mxu0 }
0x17c2   : > { %v5704_v38 = vadd.f32 %v5703_v11, %v5629_v39 }
0x17c4   : > { %5707 = vst [vmem:[%s312_s30] sm:$0xff] %v5704_v38 }
0x17c5 PF: > { %p13_p9 = scmp.ge.s32.totalorder %s6940_s25, 4   ;;  %s7906_s21 = smov %s6878_s22 }
0x17c6   : > { %s7907_s22 = smov %s6949_s28  ;;  %s7908_s23 = smov %s6940_s25 }
0x17c7   :  { %15 = sbr.rel (!%p13_p9) target bundleno = 2 (0x2), region = 117 }

</bundles_post_ra>
